<compile_context>
chip_gen: v7x
topology: tpu7x:2x2x1
jax: 0.10.0
libtpu: 0.0.40
codegen_flags: <defaults>
</compile_context>

<pallas_src>
import math
import numpy as np
import jax
import jax.numpy as jnp
from jax import lax
from jax.experimental import pallas as pl
from jax.experimental.pallas import tpu as pltpu

# ----------------------------- configuration ------------------------------
T = 4                  # independent instances (RAM time-steps) -> parallel grid axis
B = 8                  # per-instance batch (fills vreg sublanes / MXU M dim)
IMG = 32               # input image H = W, single channel
G = 9                  # retina patch size: 9 -> pool(3,3,p1) -> 3 -> pool -> 1
K = 3                  # retina num_patches == conv1 in_channels
S = 2                  # retina scale between successive patches
C1, C2, C3 = 16, 16, 32
GLIMPSE_HIDDEN = 32
LOC_HIDDEN = 32
D_OUT = GLIMPSE_HIDDEN + LOC_HIDDEN   # 64
EPS = 1e-5
LANES = 128

# ---------------------- conv weight slab (144 lanes) -----------------------
# Activation layout in the kernel: rows = y*B + b, lanes = x*C.
# Each conv is sum_ky  (8-row-shifted activations) @ banded_weight_ky.
CONV_LANES = G * C1                 # 144
C_W1 = 0                            # stacked conv1 band weights (81 rows used / 88)
C_W2 = 88                           # conv2 band weights: 3 blocks of (144, 144)
C_W3 = C_W2 + 3 * G * C2            # 520: conv3 band weights: 3 blocks of (48, 96)
C_B1T = C_W3 + 3 * 3 * C2           # 664: conv1 bias, tiled across x
C_G1T = C_B1T + 1                   # bn1 gamma, tiled across x
C_BE1T = C_B1T + 2                  # bn1 beta, tiled across x
C_B3T = C_B1T + 3                   # conv3 bias, tiled across x
CONV_ROWS = 672                     # 8-aligned

# ------------------------ fc weight slab (128 lanes) -----------------------
F_FW1 = 0                           # fc1.weight.T  (32, 32 -> pad 128)
F_FW2 = 32                          # fc2.weight.T  (32, 64) inside (128, 128)
F_LW1 = 160                         # loc_fc1.weight.T (2, 32) inside (8, 128)
F_LW2 = 168                         # loc_fc2.weight.T (32, 64) inside (128, 128)
F_FB1 = 296                         # fc1 bias
F_G2 = 297                          # bn2 gamma
F_BE2 = 298                         # bn2 beta
F_LB1 = 299                         # loc_fc1 bias
F_LB2 = 300                         # loc_fc2 bias
FC_ROWS = 304                       # 8-aligned


# ------------------------------ kernel helpers -----------------------------
def _yshift_taps(h):
    """Taps at y-1 / y / y+1 for rows laid out as y*B + b (8-row aligned shifts)."""
    z = jnp.zeros((B, h.shape[1]), jnp.float32)
    down = jnp.concatenate([z, h[:-B, :]], axis=0)   # value at y-1  (ky = 0)
    up = jnp.concatenate([h[B:, :], z], axis=0)      # value at y+1  (ky = 2)
    return down, h, up


def _conv_banded(h, wref, row0, krows):
    """3x3 'same' conv as 3 accumulating matmuls against banded weight blocks."""
    t0, t1, t2 = _yshift_taps(h)
    acc = jnp.dot(t0, wref[row0:row0 + krows, :], preferred_element_type=jnp.float32)
    acc = acc + jnp.dot(t1, wref[row0 + krows:row0 + 2 * krows, :],
                        preferred_element_type=jnp.float32)
    acc = acc + jnp.dot(t2, wref[row0 + 2 * krows:row0 + 3 * krows, :],
                        preferred_element_type=jnp.float32)
    return acc


# ------------------------------ Pallas kernel ------------------------------
def glimpse_kernel(patch_ref, loc_ref, wc_ref, wf_ref, out_ref):
    # ---- conv1: wrapper-prepared y-shifted patches -> ONE matmul + relu ----
    h1 = jnp.dot(patch_ref[...], wc_ref[C_W1:C_W1 + 88, :],
                 preferred_element_type=jnp.float32)
    h1 = jnp.maximum(h1 + wc_ref[C_B1T:C_B1T + 1, :], 0.0)            # (72, 144)

    # ---- conv2 (banded weights; bias exactly cancelled by bn1 mean) ----
    h2 = _conv_banded(h1, wc_ref, C_W2, G * C1)                        # (72, 144)

    # ---- bn1 (training-mode biased batch stats over B,H,W per channel) + relu ----
    s1 = jnp.sum(h2, axis=0, keepdims=True)                            # (1, 144)
    s2 = jnp.sum(h2 * h2, axis=0, keepdims=True)
    cs = s1[:, 0:C2]
    cq = s2[:, 0:C2]
    for xb in range(1, G):                                             # fold x blocks
        cs = cs + s1[:, xb * C2:(xb + 1) * C2]
        cq = cq + s2[:, xb * C2:(xb + 1) * C2]
    n = float(B * G * G)
    mean_c = cs / n
    var_c = cq / n - mean_c * mean_c
    mean_t = jnp.concatenate([mean_c] * G, axis=1)                     # re-tile across x
    var_t = jnp.concatenate([var_c] * G, axis=1)
    scale_t = wc_ref[C_G1T:C_G1T + 1, :] * lax.rsqrt(var_t + EPS)
    h2 = jnp.maximum((h2 - mean_t) * scale_t + wc_ref[C_BE1T:C_BE1T + 1, :], 0.0)

    # ---- maxpool1 (k=3,s=3,p=1): 9x9 -> 3x3; tile-aligned row bands, then lane bands ----
    r0 = jnp.maximum(h2[0:8], h2[8:16])                                # y in {0,1}
    r1 = jnp.maximum(jnp.maximum(h2[16:24], h2[24:32]), h2[32:40])     # y in {2,3,4}
    r2 = jnp.maximum(jnp.maximum(h2[40:48], h2[48:56]), h2[56:64])     # y in {5,6,7}
    rp = jnp.concatenate([r0, r1, r2], axis=0)                         # (24, 144)
    c0 = jnp.maximum(rp[:, 0:16], rp[:, 16:32])                        # x in {0,1}
    c1 = jnp.maximum(jnp.maximum(rp[:, 32:48], rp[:, 48:64]), rp[:, 64:80])
    c2 = jnp.maximum(jnp.maximum(rp[:, 80:96], rp[:, 96:112]), rp[:, 112:128])
    p1 = jnp.concatenate([c0, c1, c2], axis=1)                         # (24, 48)

    # ---- conv3 (banded) + bias + relu ----
    h3 = _conv_banded(p1, wc_ref, C_W3, 3 * C2)                        # (24, 144); lanes>=96 zero
    h3 = jnp.maximum(h3 + wc_ref[C_B3T:C_B3T + 1, :], 0.0)

    # ---- maxpool2 (k=3,s=3,p=1): 3x3 -> 1x1 (window y,x in {0,1}) ----
    m = jnp.maximum(h3[0:8], h3[8:16])                                 # (8, 144)
    h4 = jnp.maximum(m[:, 0:32], m[:, 32:64])                          # (8, 32) == flatten

    # ---- fc1 + relu ; fc2 (bias exactly cancelled by bn2 mean) ----
    h5 = jnp.maximum(jnp.dot(h4, wf_ref[F_FW1:F_FW1 + 32, :],
                             preferred_element_type=jnp.float32)
                     + wf_ref[F_FB1:F_FB1 + 1, :], 0.0)                # (8, 128)
    h6 = jnp.dot(h5, wf_ref[F_FW2:F_FW2 + 128, :],
                 preferred_element_type=jnp.float32)                   # (8, 128)

    # ---- bn2 (BatchNorm1d, training mode) + relu ----
    mu2 = jnp.mean(h6, axis=0, keepdims=True)
    var2 = jnp.mean((h6 - mu2) ** 2, axis=0, keepdims=True)
    h = jnp.maximum((h6 - mu2) * lax.rsqrt(var2 + EPS)
                    * wf_ref[F_G2:F_G2 + 1, :] + wf_ref[F_BE2:F_BE2 + 1, :], 0.0)

    # ---- "where" path: loc_fc1 -> loc_fc2 (no ReLU in between, per reference) ----
    l1 = jnp.dot(loc_ref[...], wf_ref[F_LW1:F_LW1 + 8, :],
                 preferred_element_type=jnp.float32) + wf_ref[F_LB1:F_LB1 + 1, :]
    l2 = jnp.dot(l1, wf_ref[F_LW2:F_LW2 + 128, :],
                 preferred_element_type=jnp.float32) + wf_ref[F_LB2:F_LB2 + 1, :]

    # ---- combined: g = relu(h * l); lane-dense (8, 128) store ----
    out_ref[...] = jnp.maximum(h * l2, 0.0)


def glimpse_network(wconv, wfc, patches, loc_pad):
    t_steps = patches.shape[0]
    grid_spec = pltpu.PrefetchScalarGridSpec(
        num_scalar_prefetch=0,
        grid=(t_steps,),
        in_specs=[
            pl.BlockSpec((None, G * B, 88), lambda t: (t, 0, 0)),     # per-step patches
            pl.BlockSpec((None, B, 8), lambda t: (t, 0, 0)),          # per-step loc
            pl.BlockSpec((CONV_ROWS, CONV_LANES), lambda t: (0, 0)),  # resident weights
            pl.BlockSpec((FC_ROWS, LANES), lambda t: (0, 0)),         # resident weights
        ],
        out_specs=pl.BlockSpec((None, B, LANES), lambda t: (t, 0, 0)),
    )
    out = pl.pallas_call(
        glimpse_kernel,
        out_shape=jax.ShapeDtypeStruct((t_steps, B, LANES), jnp.float32),
        grid_spec=grid_spec,
        compiler_params=pltpu.CompilerParams(dimension_semantics=("parallel",)),
    )(patches, loc_pad, wconv, wfc)
    return out[:, :, :D_OUT]


# ------------------------- Retina foveation (JAX glue) -------------------------
def extract_patch(x, l, size):
    # x: (N, 1, H, W) NCHW, l in [-1, 1]
    _, C, H, W = x.shape
    pad = size // 2 + 1
    xp = jnp.pad(x, ((0, 0), (0, 0), (pad, pad), (pad, pad)))
    coords = (0.5 * (l + 1.0) * jnp.asarray([H, W], jnp.float32)).astype(jnp.int32)
    start = coords + pad - size // 2

    def slice_one(xi, st):
        return lax.dynamic_slice(xi, (jnp.int32(0), st[0], st[1]), (C, size, size))

    return jax.vmap(slice_one)(xp, start)


def foveate(x, l):
    # Canonical RAM retina: K patches of sizes G*S^i, avg-pooled to GxG, channel-stacked.
    patches = []
    size = G
    for _ in range(K):
        patches.append(extract_patch(x, l, size))
        size = int(S * size)
    out = [patches[0]]
    for i in range(1, K):
        f = patches[i].shape[-1] // G
        p = patches[i].reshape(patches[i].shape[0], 1, G, f, G, f).mean(axis=(3, 5))
        out.append(p)
    return jnp.concatenate(out, axis=1)          # (N, K, G, G)  NCHW


# ----------------------------- parameter packing -----------------------------
def build_packed_params(key):
    keys = jax.random.split(key, 16)
    it = iter(keys)
    nk = lambda: next(it)

    def conv_w(k, cin, cout):          # PyTorch layout (cout, cin, 3, 3)
        return np.asarray(jax.random.normal(k, (cout, cin, 3, 3),
                                            jnp.float32)) / math.sqrt(cin * 9)

    def fc_w(k, din, dout):            # PyTorch weight (dout, din); pack W.T
        return np.asarray(jax.random.normal(k, (dout, din),
                                            jnp.float32)).T / math.sqrt(din)

    def vec(k, n, scale=0.01, base=0.0):
        return base + scale * np.asarray(jax.random.normal(k, (n,), jnp.float32))

    w1 = conv_w(nk(), K, C1);  b1 = vec(nk(), C1)
    w2 = conv_w(nk(), C1, C2)                       # conv2 bias omitted: bn1 cancels it
    g1 = vec(nk(), C2, 0.1, 1.0); be1 = vec(nk(), C2, 0.1)
    w3 = conv_w(nk(), C2, C3); b3 = vec(nk(), C3)
    fw1 = fc_w(nk(), C3, GLIMPSE_HIDDEN); fb1 = vec(nk(), GLIMPSE_HIDDEN)
    fw2 = fc_w(nk(), GLIMPSE_HIDDEN, D_OUT)         # fc2 bias omitted: bn2 cancels it
    g2 = vec(nk(), D_OUT, 0.1, 1.0); be2 = vec(nk(), D_OUT, 0.1)
    lw1 = fc_w(nk(), 2, LOC_HIDDEN); lb1 = vec(nk(), LOC_HIDDEN)
    lw2 = fc_w(nk(), LOC_HIDDEN, D_OUT); lb2 = vec(nk(), D_OUT)

    def band(w, g):
        # Banded matrix per ky: Wb[ky, (x+kx-1)*Ci + ci, x*Co + co] = w[co, ci, ky, kx]
        co, ci = w.shape[0], w.shape[1]
        out = np.zeros((3, g * ci, g * co), np.float32)
        for ky in range(3):
            for x in range(g):
                for kx in range(3):
                    xs = x + kx - 1
                    if 0 <= xs < g:
                        out[ky, xs * ci:(xs + 1) * ci, x * co:(x + 1) * co] = \
                            w[:, :, ky, kx].T
        return out

    wconv = np.zeros((CONV_ROWS, CONV_LANES), np.float32)
    wconv[C_W1:C_W1 + 3 * G * K, :] = band(w1, G).reshape(3 * G * K, G * C1)
    w2b = band(w2, G)                                   # (3, 144, 144)
    for ky in range(3):
        wconv[C_W2 + ky * (G * C1):C_W2 + (ky + 1) * (G * C1), :] = w2b[ky]
    w3b = band(w3, 3)                                   # (3, 48, 96)
    for ky in range(3):
        wconv[C_W3 + ky * (3 * C2):C_W3 + (ky + 1) * (3 * C2), 0:3 * C3] = w3b[ky]
    wconv[C_B1T, :] = np.tile(b1, G)
    wconv[C_G1T, :] = np.tile(g1, G)
    wconv[C_BE1T, :] = np.tile(be1, G)
    wconv[C_B3T, 0:3 * C3] = np.tile(b3, 3)

    wfc = np.zeros((FC_ROWS, LANES), np.float32)
    wfc[F_FW1:F_FW1 + C3, 0:GLIMPSE_HIDDEN] = fw1
    wfc[F_FW2:F_FW2 + GLIMPSE_HIDDEN, 0:D_OUT] = fw2
    wfc[F_LW1:F_LW1 + 2, 0:LOC_HIDDEN] = lw1
    wfc[F_LW2:F_LW2 + LOC_HIDDEN, 0:D_OUT] = lw2
    wfc[F_FB1, 0:GLIMPSE_HIDDEN] = fb1
    wfc[F_G2, 0:D_OUT] = g2
    wfc[F_BE2, 0:D_OUT] = be2
    wfc[F_LB1, 0:LOC_HIDDEN] = lb1
    wfc[F_LB2, 0:D_OUT] = lb2
    return jnp.asarray(wconv), jnp.asarray(wfc)


# ------------------------------- forward wrapper -------------------------------
@jax.jit
def glimpse_forward(wconv, wfc, x, l):
    t_steps, b = x.shape[0], x.shape[1]
    phi = foveate(x.reshape(t_steps * b, 1, IMG, IMG), l.reshape(t_steps * b, 2))
    phi = phi.reshape(t_steps, b, K, G, G)                     # (T, B, Cin, 9, 9)
    # layout for the kernel: rows = (y, b), lanes = (x, ci)
    phi_l = jnp.transpose(phi, (0, 3, 1, 4, 2)).reshape(t_steps, G * b, G * K)
    # conv1 "im2col": stack the three y-shifted copies along lanes (host-side, free)
    z = jnp.zeros((t_steps, b, G * K), jnp.float32)
    down = jnp.concatenate([z, phi_l[:, :-b, :]], axis=1)      # value at y-1
    up = jnp.concatenate([phi_l[:, b:, :], z], axis=1)         # value at y+1
    patches = jnp.concatenate([down, phi_l, up], axis=2)       # (T, 72, 81)
    patches = jnp.pad(patches, ((0, 0), (0, 0), (0, 88 - 3 * G * K)))
    loc_pad = jnp.pad(l, ((0, 0), (0, 0), (0, 8 - 2)))
    return glimpse_network(wconv, wfc, patches, loc_pad)


# ---------------------------------- main ----------------------------------
if __name__ == "__main__":
    key = jax.random.PRNGKey(0)
    kx, kl, kp = jax.random.split(key, 3)
    # T independent instances (e.g. RAM time-steps), each its own batch of B images.
    x = jax.random.normal(kx, (T, B, 1, IMG, IMG), jnp.float32)
    l_t_prev = jnp.clip(jax.random.normal(kl, (T, B, 2), jnp.float32), -1.0, 1.0)
    wconv, wfc = build_packed_params(kp)

    out = glimpse_forward(wconv, wfc, x, l_t_prev)
    out = jax.block_until_ready(out)
    assert out.shape == (T, B, D_OUT) and out.dtype == jnp.float32
    assert bool(jnp.all(jnp.isfinite(out)))
    print("KERNEL_OK")
</pallas_src>

<mosaic_0001>
module attributes {stable_mosaic.version = 11 : i64} {
  func.func @glimpse_kernel(%arg0: i32, %arg1: memref<1x72x88xf32, #tpu.memory_space<vmem>>, %arg2: memref<1x8x8xf32, #tpu.memory_space<vmem>>, %arg3: memref<672x144xf32, #tpu.memory_space<vmem>>, %arg4: memref<304x128xf32, #tpu.memory_space<vmem>>, %arg5: memref<1x8x128xf32, #tpu.memory_space<vmem>>) attributes {dimension_semantics = [#tpu.dimension_semantics<parallel>], iteration_bounds = array<i64: 4>, scalar_prefetch = 0 : i64, scratch_operands = 0 : i64, tpu.core_type = #tpu.core_type<tc>, window_params = [{transform_indices = @transform_0, window_bounds = array<i64: 1, 72, 88>}, {transform_indices = @transform_1, window_bounds = array<i64: 1, 8, 8>}, {pipeline_mode = #tpu.pipeline_mode<synchronous>, transform_indices = @transform_2, window_bounds = array<i64: 672, 144>}, {pipeline_mode = #tpu.pipeline_mode<synchronous>, transform_indices = @transform_3, window_bounds = array<i64: 304, 128>}, {transform_indices = @transform_4, window_bounds = array<i64: 1, 8, 128>}]} {
    %c0 = arith.constant 0 : index
    %c0_0 = arith.constant 0 : index
    %c0_1 = arith.constant 0 : index
    %0 = vector.load %arg1[%c0, %c0_0, %c0_1] : memref<1x72x88xf32, #tpu.memory_space<vmem>>, vector<1x72x88xf32>
    %1 = vector.shape_cast %0 : vector<1x72x88xf32> to vector<72x88xf32>
    %c0_2 = arith.constant 0 : index
    %c0_3 = arith.constant 0 : index
    %2 = vector.load %arg3[%c0_2, %c0_3] : memref<672x144xf32, #tpu.memory_space<vmem>>, vector<88x144xf32>
    %cst = arith.constant dense<0.000000e+00> : vector<72x144xf32>
    %3 = tpu.matmul %1, %2, %cst {dimension_numbers = #tpu.dot_dimension_numbers<[1], [0], [0], [1], [0, 0, 1, 1], [], []>} : vector<72x88xf32>, vector<88x144xf32>, vector<72x144xf32> -> vector<72x144xf32>
    %c664 = arith.constant 664 : index
    %c0_4 = arith.constant 0 : index
    %4 = vector.load %arg3[%c664, %c0_4] : memref<672x144xf32, #tpu.memory_space<vmem>>, vector<1x144xf32>
    %5 = vector.broadcast %4 : vector<1x144xf32> to vector<72x144xf32>
    %6 = arith.addf %3, %5 : vector<72x144xf32>
    %cst_5 = arith.constant 0.000000e+00 : f32
    %7 = vector.broadcast %cst_5 : f32 to vector<72x144xf32>
    %8 = arith.maximumf %6, %7 : vector<72x144xf32>
    %cst_6 = arith.constant 0.000000e+00 : f32
    %9 = vector.broadcast %cst_6 : f32 to vector<8x144xf32>
    %10 = vector.extract_strided_slice %8 {offsets = [0, 0], sizes = [64, 144], strides = [1, 1]} : vector<72x144xf32> to vector<64x144xf32>
    %11 = tpu.concatenate %9, %10 in 0 : vector<8x144xf32>, vector<64x144xf32> -> vector<72x144xf32>
    %12 = vector.extract_strided_slice %8 {offsets = [8, 0], sizes = [64, 144], strides = [1, 1]} : vector<72x144xf32> to vector<64x144xf32>
    %13 = tpu.concatenate %12, %9 in 0 : vector<64x144xf32>, vector<8x144xf32> -> vector<72x144xf32>
    %c88 = arith.constant 88 : index
    %c0_7 = arith.constant 0 : index
    %14 = vector.load %arg3[%c88, %c0_7] : memref<672x144xf32, #tpu.memory_space<vmem>>, vector<144x144xf32>
    %cst_8 = arith.constant dense<0.000000e+00> : vector<72x144xf32>
    %15 = tpu.matmul %11, %14, %cst_8 {dimension_numbers = #tpu.dot_dimension_numbers<[1], [0], [0], [1], [0, 0, 1, 1], [], []>} : vector<72x144xf32>, vector<144x144xf32>, vector<72x144xf32> -> vector<72x144xf32>
    %c232 = arith.constant 232 : index
    %c0_9 = arith.constant 0 : index
    %16 = vector.load %arg3[%c232, %c0_9] : memref<672x144xf32, #tpu.memory_space<vmem>>, vector<144x144xf32>
    %cst_10 = arith.constant dense<0.000000e+00> : vector<72x144xf32>
    %17 = tpu.matmul %8, %16, %cst_10 {dimension_numbers = #tpu.dot_dimension_numbers<[1], [0], [0], [1], [0, 0, 1, 1], [], []>} : vector<72x144xf32>, vector<144x144xf32>, vector<72x144xf32> -> vector<72x144xf32>
    %18 = arith.addf %15, %17 : vector<72x144xf32>
    %c376 = arith.constant 376 : index
    %c0_11 = arith.constant 0 : index
    %19 = vector.load %arg3[%c376, %c0_11] : memref<672x144xf32, #tpu.memory_space<vmem>>, vector<144x144xf32>
    %cst_12 = arith.constant dense<0.000000e+00> : vector<72x144xf32>
    %20 = tpu.matmul %13, %19, %cst_12 {dimension_numbers = #tpu.dot_dimension_numbers<[1], [0], [0], [1], [0, 0, 1, 1], [], []>} : vector<72x144xf32>, vector<144x144xf32>, vector<72x144xf32> -> vector<72x144xf32>
    %21 = arith.addf %18, %20 : vector<72x144xf32>
    %cst_13 = arith.constant dense<0.000000e+00> : vector<144xf32>
    %22 = vector.multi_reduction <add>, %21, %cst_13 [0] : vector<72x144xf32> to vector<144xf32>
    %23 = vector.shape_cast %22 : vector<144xf32> to vector<1x144xf32>
    %24 = arith.mulf %21, %21 : vector<72x144xf32>
    %cst_14 = arith.constant dense<0.000000e+00> : vector<144xf32>
    %25 = vector.multi_reduction <add>, %24, %cst_14 [0] : vector<72x144xf32> to vector<144xf32>
    %26 = vector.shape_cast %25 : vector<144xf32> to vector<1x144xf32>
    %27 = vector.extract_strided_slice %23 {offsets = [0, 0], sizes = [1, 16], strides = [1, 1]} : vector<1x144xf32> to vector<1x16xf32>
    %28 = vector.extract_strided_slice %26 {offsets = [0, 0], sizes = [1, 16], strides = [1, 1]} : vector<1x144xf32> to vector<1x16xf32>
    %29 = vector.extract_strided_slice %23 {offsets = [0, 16], sizes = [1, 16], strides = [1, 1]} : vector<1x144xf32> to vector<1x16xf32>
    %30 = arith.addf %27, %29 : vector<1x16xf32>
    %31 = vector.extract_strided_slice %26 {offsets = [0, 16], sizes = [1, 16], strides = [1, 1]} : vector<1x144xf32> to vector<1x16xf32>
    %32 = arith.addf %28, %31 : vector<1x16xf32>
    %33 = vector.extract_strided_slice %23 {offsets = [0, 32], sizes = [1, 16], strides = [1, 1]} : vector<1x144xf32> to vector<1x16xf32>
    %34 = arith.addf %30, %33 : vector<1x16xf32>
    %35 = vector.extract_strided_slice %26 {offsets = [0, 32], sizes = [1, 16], strides = [1, 1]} : vector<1x144xf32> to vector<1x16xf32>
    %36 = arith.addf %32, %35 : vector<1x16xf32>
    %37 = vector.extract_strided_slice %23 {offsets = [0, 48], sizes = [1, 16], strides = [1, 1]} : vector<1x144xf32> to vector<1x16xf32>
    %38 = arith.addf %34, %37 : vector<1x16xf32>
    %39 = vector.extract_strided_slice %26 {offsets = [0, 48], sizes = [1, 16], strides = [1, 1]} : vector<1x144xf32> to vector<1x16xf32>
    %40 = arith.addf %36, %39 : vector<1x16xf32>
    %41 = vector.extract_strided_slice %23 {offsets = [0, 64], sizes = [1, 16], strides = [1, 1]} : vector<1x144xf32> to vector<1x16xf32>
    %42 = arith.addf %38, %41 : vector<1x16xf32>
    %43 = vector.extract_strided_slice %26 {offsets = [0, 64], sizes = [1, 16], strides = [1, 1]} : vector<1x144xf32> to vector<1x16xf32>
    %44 = arith.addf %40, %43 : vector<1x16xf32>
    %45 = vector.extract_strided_slice %23 {offsets = [0, 80], sizes = [1, 16], strides = [1, 1]} : vector<1x144xf32> to vector<1x16xf32>
    %46 = arith.addf %42, %45 : vector<1x16xf32>
    %47 = vector.extract_strided_slice %26 {offsets = [0, 80], sizes = [1, 16], strides = [1, 1]} : vector<1x144xf32> to vector<1x16xf32>
    %48 = arith.addf %44, %47 : vector<1x16xf32>
    %49 = vector.extract_strided_slice %23 {offsets = [0, 96], sizes = [1, 16], strides = [1, 1]} : vector<1x144xf32> to vector<1x16xf32>
    %50 = arith.addf %46, %49 : vector<1x16xf32>
    %51 = vector.extract_strided_slice %26 {offsets = [0, 96], sizes = [1, 16], strides = [1, 1]} : vector<1x144xf32> to vector<1x16xf32>
    %52 = arith.addf %48, %51 : vector<1x16xf32>
    %53 = vector.extract_strided_slice %23 {offsets = [0, 112], sizes = [1, 16], strides = [1, 1]} : vector<1x144xf32> to vector<1x16xf32>
    %54 = arith.addf %50, %53 : vector<1x16xf32>
    %55 = vector.extract_strided_slice %26 {offsets = [0, 112], sizes = [1, 16], strides = [1, 1]} : vector<1x144xf32> to vector<1x16xf32>
    %56 = arith.addf %52, %55 : vector<1x16xf32>
    %57 = vector.extract_strided_slice %23 {offsets = [0, 128], sizes = [1, 16], strides = [1, 1]} : vector<1x144xf32> to vector<1x16xf32>
    %58 = arith.addf %54, %57 : vector<1x16xf32>
    %59 = vector.extract_strided_slice %26 {offsets = [0, 128], sizes = [1, 16], strides = [1, 1]} : vector<1x144xf32> to vector<1x16xf32>
    %60 = arith.addf %56, %59 : vector<1x16xf32>
    %cst_15 = arith.constant 6.480000e+02 : f32
    %61 = vector.broadcast %cst_15 : f32 to vector<1x16xf32>
    %62 = arith.divf %58, %61 : vector<1x16xf32>
    %cst_16 = arith.constant 6.480000e+02 : f32
    %63 = vector.broadcast %cst_16 : f32 to vector<1x16xf32>
    %64 = arith.divf %60, %63 : vector<1x16xf32>
    %65 = arith.mulf %62, %62 : vector<1x16xf32>
    %66 = arith.subf %64, %65 : vector<1x16xf32>
    %67 = tpu.concatenate %62, %62, %62, %62, %62, %62, %62, %62, %62 in 1 : vector<1x16xf32>, vector<1x16xf32>, vector<1x16xf32>, vector<1x16xf32>, vector<1x16xf32>, vector<1x16xf32>, vector<1x16xf32>, vector<1x16xf32>, vector<1x16xf32> -> vector<1x144xf32>
    %68 = tpu.concatenate %66, %66, %66, %66, %66, %66, %66, %66, %66 in 1 : vector<1x16xf32>, vector<1x16xf32>, vector<1x16xf32>, vector<1x16xf32>, vector<1x16xf32>, vector<1x16xf32>, vector<1x16xf32>, vector<1x16xf32>, vector<1x16xf32> -> vector<1x144xf32>
    %c665 = arith.constant 665 : index
    %c0_17 = arith.constant 0 : index
    %69 = vector.load %arg3[%c665, %c0_17] : memref<672x144xf32, #tpu.memory_space<vmem>>, vector<1x144xf32>
    %cst_18 = arith.constant 9.99999974E-6 : f32
    %70 = vector.broadcast %cst_18 : f32 to vector<1x144xf32>
    %71 = arith.addf %68, %70 : vector<1x144xf32>
    %72 = math.rsqrt %71 : vector<1x144xf32>
    %73 = arith.mulf %69, %72 : vector<1x144xf32>
    %74 = vector.broadcast %67 : vector<1x144xf32> to vector<72x144xf32>
    %75 = arith.subf %21, %74 : vector<72x144xf32>
    %76 = vector.broadcast %73 : vector<1x144xf32> to vector<72x144xf32>
    %77 = arith.mulf %75, %76 : vector<72x144xf32>
    %c666 = arith.constant 666 : index
    %c0_19 = arith.constant 0 : index
    %78 = vector.load %arg3[%c666, %c0_19] : memref<672x144xf32, #tpu.memory_space<vmem>>, vector<1x144xf32>
    %79 = vector.broadcast %78 : vector<1x144xf32> to vector<72x144xf32>
    %80 = arith.addf %77, %79 : vector<72x144xf32>
    %cst_20 = arith.constant 0.000000e+00 : f32
    %81 = vector.broadcast %cst_20 : f32 to vector<72x144xf32>
    %82 = arith.maximumf %80, %81 : vector<72x144xf32>
    %83 = vector.extract_strided_slice %82 {offsets = [0, 0], sizes = [8, 144], strides = [1, 1]} : vector<72x144xf32> to vector<8x144xf32>
    %84 = vector.extract_strided_slice %82 {offsets = [8, 0], sizes = [8, 144], strides = [1, 1]} : vector<72x144xf32> to vector<8x144xf32>
    %85 = arith.maximumf %83, %84 : vector<8x144xf32>
    %86 = vector.extract_strided_slice %82 {offsets = [16, 0], sizes = [8, 144], strides = [1, 1]} : vector<72x144xf32> to vector<8x144xf32>
    %87 = vector.extract_strided_slice %82 {offsets = [24, 0], sizes = [8, 144], strides = [1, 1]} : vector<72x144xf32> to vector<8x144xf32>
    %88 = arith.maximumf %86, %87 : vector<8x144xf32>
    %89 = vector.extract_strided_slice %82 {offsets = [32, 0], sizes = [8, 144], strides = [1, 1]} : vector<72x144xf32> to vector<8x144xf32>
    %90 = arith.maximumf %88, %89 : vector<8x144xf32>
    %91 = vector.extract_strided_slice %82 {offsets = [40, 0], sizes = [8, 144], strides = [1, 1]} : vector<72x144xf32> to vector<8x144xf32>
    %92 = vector.extract_strided_slice %82 {offsets = [48, 0], sizes = [8, 144], strides = [1, 1]} : vector<72x144xf32> to vector<8x144xf32>
    %93 = arith.maximumf %91, %92 : vector<8x144xf32>
    %94 = vector.extract_strided_slice %82 {offsets = [56, 0], sizes = [8, 144], strides = [1, 1]} : vector<72x144xf32> to vector<8x144xf32>
    %95 = arith.maximumf %93, %94 : vector<8x144xf32>
    %96 = tpu.concatenate %85, %90, %95 in 0 : vector<8x144xf32>, vector<8x144xf32>, vector<8x144xf32> -> vector<24x144xf32>
    %97 = vector.extract_strided_slice %96 {offsets = [0, 0], sizes = [24, 16], strides = [1, 1]} : vector<24x144xf32> to vector<24x16xf32>
    %98 = vector.extract_strided_slice %96 {offsets = [0, 16], sizes = [24, 16], strides = [1, 1]} : vector<24x144xf32> to vector<24x16xf32>
    %99 = arith.maximumf %97, %98 : vector<24x16xf32>
    %100 = vector.extract_strided_slice %96 {offsets = [0, 32], sizes = [24, 16], strides = [1, 1]} : vector<24x144xf32> to vector<24x16xf32>
    %101 = vector.extract_strided_slice %96 {offsets = [0, 48], sizes = [24, 16], strides = [1, 1]} : vector<24x144xf32> to vector<24x16xf32>
    %102 = arith.maximumf %100, %101 : vector<24x16xf32>
    %103 = vector.extract_strided_slice %96 {offsets = [0, 64], sizes = [24, 16], strides = [1, 1]} : vector<24x144xf32> to vector<24x16xf32>
    %104 = arith.maximumf %102, %103 : vector<24x16xf32>
    %105 = vector.extract_strided_slice %96 {offsets = [0, 80], sizes = [24, 16], strides = [1, 1]} : vector<24x144xf32> to vector<24x16xf32>
    %106 = vector.extract_strided_slice %96 {offsets = [0, 96], sizes = [24, 16], strides = [1, 1]} : vector<24x144xf32> to vector<24x16xf32>
    %107 = arith.maximumf %105, %106 : vector<24x16xf32>
    %108 = vector.extract_strided_slice %96 {offsets = [0, 112], sizes = [24, 16], strides = [1, 1]} : vector<24x144xf32> to vector<24x16xf32>
    %109 = arith.maximumf %107, %108 : vector<24x16xf32>
    %110 = tpu.concatenate %99, %104, %109 in 1 : vector<24x16xf32>, vector<24x16xf32>, vector<24x16xf32> -> vector<24x48xf32>
    %cst_21 = arith.constant 0.000000e+00 : f32
    %111 = vector.broadcast %cst_21 : f32 to vector<8x48xf32>
    %112 = vector.extract_strided_slice %110 {offsets = [0, 0], sizes = [16, 48], strides = [1, 1]} : vector<24x48xf32> to vector<16x48xf32>
    %113 = tpu.concatenate %111, %112 in 0 : vector<8x48xf32>, vector<16x48xf32> -> vector<24x48xf32>
    %114 = vector.extract_strided_slice %110 {offsets = [8, 0], sizes = [16, 48], strides = [1, 1]} : vector<24x48xf32> to vector<16x48xf32>
    %115 = tpu.concatenate %114, %111 in 0 : vector<16x48xf32>, vector<8x48xf32> -> vector<24x48xf32>
    %c520 = arith.constant 520 : index
    %c0_22 = arith.constant 0 : index
    %116 = vector.load %arg3[%c520, %c0_22] : memref<672x144xf32, #tpu.memory_space<vmem>>, vector<48x144xf32>
    %cst_23 = arith.constant dense<0.000000e+00> : vector<24x144xf32>
    %117 = tpu.matmul %113, %116, %cst_23 {dimension_numbers = #tpu.dot_dimension_numbers<[1], [0], [0], [1], [0, 0, 1, 1], [], []>} : vector<24x48xf32>, vector<48x144xf32>, vector<24x144xf32> -> vector<24x144xf32>
    %c568 = arith.constant 568 : index
    %c0_24 = arith.constant 0 : index
    %118 = vector.load %arg3[%c568, %c0_24] : memref<672x144xf32, #tpu.memory_space<vmem>>, vector<48x144xf32>
    %cst_25 = arith.constant dense<0.000000e+00> : vector<24x144xf32>
    %119 = tpu.matmul %110, %118, %cst_25 {dimension_numbers = #tpu.dot_dimension_numbers<[1], [0], [0], [1], [0, 0, 1, 1], [], []>} : vector<24x48xf32>, vector<48x144xf32>, vector<24x144xf32> -> vector<24x144xf32>
    %120 = arith.addf %117, %119 : vector<24x144xf32>
    %c616 = arith.constant 616 : index
    %c0_26 = arith.constant 0 : index
    %121 = vector.load %arg3[%c616, %c0_26] : memref<672x144xf32, #tpu.memory_space<vmem>>, vector<48x144xf32>
    %cst_27 = arith.constant dense<0.000000e+00> : vector<24x144xf32>
    %122 = tpu.matmul %115, %121, %cst_27 {dimension_numbers = #tpu.dot_dimension_numbers<[1], [0], [0], [1], [0, 0, 1, 1], [], []>} : vector<24x48xf32>, vector<48x144xf32>, vector<24x144xf32> -> vector<24x144xf32>
    %123 = arith.addf %120, %122 : vector<24x144xf32>
    %c667 = arith.constant 667 : index
    %c0_28 = arith.constant 0 : index
    %124 = vector.load %arg3[%c667, %c0_28] : memref<672x144xf32, #tpu.memory_space<vmem>>, vector<1x144xf32>
    %125 = vector.broadcast %124 : vector<1x144xf32> to vector<24x144xf32>
    %126 = arith.addf %123, %125 : vector<24x144xf32>
    %cst_29 = arith.constant 0.000000e+00 : f32
    %127 = vector.broadcast %cst_29 : f32 to vector<24x144xf32>
    %128 = arith.maximumf %126, %127 : vector<24x144xf32>
    %129 = vector.extract_strided_slice %128 {offsets = [0, 0], sizes = [8, 144], strides = [1, 1]} : vector<24x144xf32> to vector<8x144xf32>
    %130 = vector.extract_strided_slice %128 {offsets = [8, 0], sizes = [8, 144], strides = [1, 1]} : vector<24x144xf32> to vector<8x144xf32>
    %131 = arith.maximumf %129, %130 : vector<8x144xf32>
    %132 = vector.extract_strided_slice %131 {offsets = [0, 0], sizes = [8, 32], strides = [1, 1]} : vector<8x144xf32> to vector<8x32xf32>
    %133 = vector.extract_strided_slice %131 {offsets = [0, 32], sizes = [8, 32], strides = [1, 1]} : vector<8x144xf32> to vector<8x32xf32>
    %134 = arith.maximumf %132, %133 : vector<8x32xf32>
    %c0_30 = arith.constant 0 : index
    %c0_31 = arith.constant 0 : index
    %135 = vector.load %arg4[%c0_30, %c0_31] : memref<304x128xf32, #tpu.memory_space<vmem>>, vector<32x128xf32>
    %cst_32 = arith.constant dense<0.000000e+00> : vector<8x128xf32>
    %136 = tpu.matmul %134, %135, %cst_32 {dimension_numbers = #tpu.dot_dimension_numbers<[1], [0], [0], [1], [0, 0, 1, 1], [], []>} : vector<8x32xf32>, vector<32x128xf32>, vector<8x128xf32> -> vector<8x128xf32>
    %c296 = arith.constant 296 : index
    %c0_33 = arith.constant 0 : index
    %137 = vector.load %arg4[%c296, %c0_33] : memref<304x128xf32, #tpu.memory_space<vmem>>, vector<1x128xf32>
    %138 = vector.broadcast %137 : vector<1x128xf32> to vector<8x128xf32>
    %139 = arith.addf %136, %138 : vector<8x128xf32>
    %cst_34 = arith.constant 0.000000e+00 : f32
    %140 = vector.broadcast %cst_34 : f32 to vector<8x128xf32>
    %141 = arith.maximumf %139, %140 : vector<8x128xf32>
    %c32 = arith.constant 32 : index
    %c0_35 = arith.constant 0 : index
    %142 = vector.load %arg4[%c32, %c0_35] : memref<304x128xf32, #tpu.memory_space<vmem>>, vector<128x128xf32>
    %cst_36 = arith.constant dense<0.000000e+00> : vector<8x128xf32>
    %143 = tpu.matmul %141, %142, %cst_36 {dimension_numbers = #tpu.dot_dimension_numbers<[1], [0], [0], [1], [0, 0, 1, 1], [], []>} : vector<8x128xf32>, vector<128x128xf32>, vector<8x128xf32> -> vector<8x128xf32>
    %cst_37 = arith.constant dense<0.000000e+00> : vector<128xf32>
    %144 = vector.multi_reduction <add>, %143, %cst_37 [0] : vector<8x128xf32> to vector<128xf32>
    %145 = vector.shape_cast %144 : vector<128xf32> to vector<1x128xf32>
    %cst_38 = arith.constant 8.000000e+00 : f32
    %146 = vector.broadcast %cst_38 : f32 to vector<1x128xf32>
    %147 = arith.divf %145, %146 : vector<1x128xf32>
    %148 = vector.broadcast %147 : vector<1x128xf32> to vector<8x128xf32>
    %149 = arith.subf %143, %148 : vector<8x128xf32>
    %150 = arith.mulf %149, %149 : vector<8x128xf32>
    %cst_39 = arith.constant dense<0.000000e+00> : vector<128xf32>
    %151 = vector.multi_reduction <add>, %150, %cst_39 [0] : vector<8x128xf32> to vector<128xf32>
    %152 = vector.shape_cast %151 : vector<128xf32> to vector<1x128xf32>
    %cst_40 = arith.constant 8.000000e+00 : f32
    %153 = vector.broadcast %cst_40 : f32 to vector<1x128xf32>
    %154 = arith.divf %152, %153 : vector<1x128xf32>
    %155 = vector.broadcast %147 : vector<1x128xf32> to vector<8x128xf32>
    %156 = arith.subf %143, %155 : vector<8x128xf32>
    %cst_41 = arith.constant 9.99999974E-6 : f32
    %157 = vector.broadcast %cst_41 : f32 to vector<1x128xf32>
    %158 = arith.addf %154, %157 : vector<1x128xf32>
    %159 = math.rsqrt %158 : vector<1x128xf32>
    %160 = vector.broadcast %159 : vector<1x128xf32> to vector<8x128xf32>
    %161 = arith.mulf %156, %160 : vector<8x128xf32>
    %c297 = arith.constant 297 : index
    %c0_42 = arith.constant 0 : index
    %162 = vector.load %arg4[%c297, %c0_42] : memref<304x128xf32, #tpu.memory_space<vmem>>, vector<1x128xf32>
    %163 = vector.broadcast %162 : vector<1x128xf32> to vector<8x128xf32>
    %164 = arith.mulf %161, %163 : vector<8x128xf32>
    %c298 = arith.constant 298 : index
    %c0_43 = arith.constant 0 : index
    %165 = vector.load %arg4[%c298, %c0_43] : memref<304x128xf32, #tpu.memory_space<vmem>>, vector<1x128xf32>
    %166 = vector.broadcast %165 : vector<1x128xf32> to vector<8x128xf32>
    %167 = arith.addf %164, %166 : vector<8x128xf32>
    %cst_44 = arith.constant 0.000000e+00 : f32
    %168 = vector.broadcast %cst_44 : f32 to vector<8x128xf32>
    %169 = arith.maximumf %167, %168 : vector<8x128xf32>
    %c0_45 = arith.constant 0 : index
    %c0_46 = arith.constant 0 : index
    %c0_47 = arith.constant 0 : index
    %170 = vector.load %arg2[%c0_45, %c0_46, %c0_47] : memref<1x8x8xf32, #tpu.memory_space<vmem>>, vector<1x8x8xf32>
    %171 = vector.shape_cast %170 : vector<1x8x8xf32> to vector<8x8xf32>
    %c160 = arith.constant 160 : index
    %c0_48 = arith.constant 0 : index
    %172 = vector.load %arg4[%c160, %c0_48] : memref<304x128xf32, #tpu.memory_space<vmem>>, vector<8x128xf32>
    %cst_49 = arith.constant dense<0.000000e+00> : vector<8x128xf32>
    %173 = tpu.matmul %171, %172, %cst_49 {dimension_numbers = #tpu.dot_dimension_numbers<[1], [0], [0], [1], [0, 0, 1, 1], [], []>} : vector<8x8xf32>, vector<8x128xf32>, vector<8x128xf32> -> vector<8x128xf32>
    %c299 = arith.constant 299 : index
    %c0_50 = arith.constant 0 : index
    %174 = vector.load %arg4[%c299, %c0_50] : memref<304x128xf32, #tpu.memory_space<vmem>>, vector<1x128xf32>
    %175 = vector.broadcast %174 : vector<1x128xf32> to vector<8x128xf32>
    %176 = arith.addf %173, %175 : vector<8x128xf32>
    %c168 = arith.constant 168 : index
    %c0_51 = arith.constant 0 : index
    %177 = vector.load %arg4[%c168, %c0_51] : memref<304x128xf32, #tpu.memory_space<vmem>>, vector<128x128xf32>
    %cst_52 = arith.constant dense<0.000000e+00> : vector<8x128xf32>
    %178 = tpu.matmul %176, %177, %cst_52 {dimension_numbers = #tpu.dot_dimension_numbers<[1], [0], [0], [1], [0, 0, 1, 1], [], []>} : vector<8x128xf32>, vector<128x128xf32>, vector<8x128xf32> -> vector<8x128xf32>
    %c300 = arith.constant 300 : index
    %c0_53 = arith.constant 0 : index
    %179 = vector.load %arg4[%c300, %c0_53] : memref<304x128xf32, #tpu.memory_space<vmem>>, vector<1x128xf32>
    %180 = vector.broadcast %179 : vector<1x128xf32> to vector<8x128xf32>
    %181 = arith.addf %178, %180 : vector<8x128xf32>
    %182 = arith.mulf %169, %181 : vector<8x128xf32>
    %cst_54 = arith.constant 0.000000e+00 : f32
    %183 = vector.broadcast %cst_54 : f32 to vector<8x128xf32>
    %184 = arith.maximumf %182, %183 : vector<8x128xf32>
    %c0_55 = arith.constant 0 : index
    %c0_56 = arith.constant 0 : index
    %c0_57 = arith.constant 0 : index
    %185 = vector.load %arg5[%c0_55, %c0_56, %c0_57] : memref<1x8x128xf32, #tpu.memory_space<vmem>>, vector<1x8x128xf32>
    %186 = vector.shape_cast %185 : vector<1x8x128xf32> to vector<8x128xf32>
    %187 = vector.shape_cast %184 : vector<8x128xf32> to vector<1x8x128xf32>
    tpu.vector_store %arg5[%c0_55, %c0_56, %c0_57], %187 {strides = array<i32>} : memref<1x8x128xf32, #tpu.memory_space<vmem>>, vector<1x8x128xf32>,
    return
  }
  func.func @transform_0(%arg0: i32) -> (i32, i32, i32) {
    %c0_i32 = arith.constant 0 : i32
    %c0_i32_0 = arith.constant 0 : i32
    %c0_i32_1 = arith.constant 0 : i32
    return %arg0, %c0_i32, %c0_i32_0 : i32, i32, i32
  }
  func.func @transform_1(%arg0: i32) -> (i32, i32, i32) {
    %c0_i32 = arith.constant 0 : i32
    %c0_i32_0 = arith.constant 0 : i32
    %c0_i32_1 = arith.constant 0 : i32
    return %arg0, %c0_i32, %c0_i32_0 : i32, i32, i32
  }
  func.func @transform_2(%arg0: i32) -> (i32, i32) {
    %c0_i32 = arith.constant 0 : i32
    %c0_i32_0 = arith.constant 0 : i32
    %c0_i32_1 = arith.constant 0 : i32
    return %c0_i32, %c0_i32_0 : i32, i32
  }
  func.func @transform_3(%arg0: i32) -> (i32, i32) {
    %c0_i32 = arith.constant 0 : i32
    %c0_i32_0 = arith.constant 0 : i32
    %c0_i32_1 = arith.constant 0 : i32
    return %c0_i32, %c0_i32_0 : i32, i32
  }
  func.func @transform_4(%arg0: i32) -> (i32, i32, i32) {
    %c0_i32 = arith.constant 0 : i32
    %c0_i32_0 = arith.constant 0 : i32
    %c0_i32_1 = arith.constant 0 : i32
    return %arg0, %c0_i32, %c0_i32_0 : i32, i32, i32
  }
}

</mosaic_0001>

<bundles_post_ra>
// kernel: custom-call.2
= control target key start
LH: loop header
LB: loop body
LE: loop exit
PB: predicated region body
PF: predicated region fallthrough
CT: control target
= control target key end

     0   :  { %s6_s0 = inlined_call_operand.vmem [shape: f32[32,1,36,36], index: 0, kind: output, shape index: {}]  }

// kernel: custom-call.1
= control target key start
LH: loop header
LB: loop body
LE: loop exit
PB: predicated region body
PF: predicated region fallthrough
CT: control target
= control target key end

     0   :  { %s6_s0 = inlined_call_operand.vmem [shape: f32[32,1,18,18], index: 0, kind: output, shape index: {}]  }

// kernel: custom-call
= control target key start
LH: loop header
LB: loop body
LE: loop exit
PB: predicated region body
PF: predicated region fallthrough
CT: control target
= control target key end

     0   :  { %s6_s0 = inlined_call_operand.vmem [shape: f32[32,1,9,9], index: 0, kind: output, shape index: {}]  }

// kernel: glimpse_forward.1
= control target key start
LH: loop header
LB: loop body
LE: loop exit
PB: predicated region body
PF: predicated region fallthrough
CT: control target
= control target key end

     0   :  { %9 = vsyncpa [#allocation3], 0  ;;  %s3844_s0 = inlined_call_operand.vmem [shape: f32[4,72,88], index: 0, kind: input, shape index: {}]   ;;  %s3845_s1 = inlined_call_operand.vmem [shape: f32[4,8,8], index: 1, kind: input, shape index: {}]   ;;  %s3846_s2 = inlined_call_operand.vmem [shape: f32[672,144], index: 2, kind: input, shape index: {}]   ;;  %s3847_s3 = inlined_call_operand.vmem [shape: f32[304,128], index: 3, kind: input, shape index: {}]   ;;  %s3848_s4 = inlined_call_operand.hbm [shape: f32[4,8,128], index: 4, kind: output, shape index: {}]  }
   0x1   :  { %11 = vsyncpa [#allocation3 + $0x1], 0  ;;  %s2677_s15 = smov 0   ;;  %s2679_s16 = smov 0  }
   0x2   :  { %s2681_s17 = smov 0   ;;  %s2683_s18 = smov 0  }
   0x3 LB: > { %s2698_s19 = sadd.s32 4294967295, %s2638_s18   ;;  %s2057_s20 = sadd.s32 4294967294, %s2638_s18   ;;  %s2638_s18 = sphi %s2683_s18, %s3854_s18   ;;  %s2634_s17 = sphi %s2681_s17, %s3853_s17   ;;  %s2630_s16 = sphi %s2679_s16, %s3852_s16   ;;  %s2626_s15 = sphi %s2677_s15, %s3851_s15  }
   0x4   : > { %s2702_s21 = sadd.s32 1, %s2638_s18   ;;  %s118_s22 = sadd.s32 1, %s2634_s17 }
   0x5   : > { %s115_s23 = ssub.s32 %s2638_s18, %s2702_s21  ;;  %p128_p0 = scmp.ne.s32.totalorder %s2634_s17, %s2630_s16 }
   0x6   : > { %p116_p1 = scmp.eq.s32.totalorder %s115_s23, 0  ;;  %p129_p2 = scmp.eq.s32.totalorder %s2698_s19, 3 }
   0x7   : > { %p134_p3 = scmp.ne.s32.totalorder %s2630_s16, %s2626_s15  ;;  %p135_p4 = scmp.eq.s32.totalorder %s2057_s20, 3 }
   0x8   : > { %s2713_s24 = scalar_select %p116_p1, %s2634_s17, %s118_s22  }
   0x9   : > { %p2715_p5 = por %p129_p2, %p128_p0  ;;  %p2719_p6 = por %p135_p4, %p134_p3 }
   0xa   : > { %p2060_p7 = scmp.ge.s32.totalorder %s2638_s18, 1  ;;  %p174_p8 = scmp.lt.s32.totalorder %s2638_s18, 5 }
   0xc   : > { %p175_p9 = pnand %p2060_p7, %p174_p8 }
   0xd   : > { %v223_v0 = vld [vmem:[%s3846_s2 + $0x8] sm:$0xff] (!%p175_p9)  ;;  %v225_v1 = vld [vmem:[%s3846_s2 + $0x18] sm:$0xff] (!%p175_p9)  ;;  %v222_v2 = vld [vmem:[%s3846_s2] sm:$0xff] (!%p175_p9)  ;;  %v2640_v7 = vmov (!%p175_p9), 0.0   ;;  %p204_p10 = scmp.lt.s32.totalorder (!%p175_p9), %s2698_s19, 3  ;;  %vm257_vm0 = vcmask (!%p175_p9), 719872  }
   0xe   : > { %178 = sbr.rel (%p175_p9) target bundleno = 2157 (0x86d), region = 36  ;;  %v2247_v3 = vpack.c.bf16 (!%p175_p9), %v225_v1, %v223_v0  ;;  %v224_v4 = vld [vmem:[%s3846_s2 + $0x10] sm:$0xff] (!%p175_p9)  ;;  %v227_v5 = vld [vmem:[%s3846_s2 + $0x28] sm:$0xff] (!%p175_p9)  ;;  %v229_v6 = vld [vmem:[%s3846_s2 + $0x38] sm:$0xff] (!%p175_p9)  ;;  %349 = vmatprep.mubr.f32.mxu0 (!%p175_p9), %v2640_v7  ;;  %vm494_vm1 = vcmask (!%p175_p9), 130048   ;;  %s2641_s23 = smov (!%p175_p9), 96  }
   0xf   : > { %v2249_v8 = vpack.c.bf16 (!%p175_p9), %v224_v4, %v222_v2  ;;  %v2251_v9 = vpack.c.bf16 (!%p175_p9), %v229_v6, %v227_v5  ;;  %v226_v10 = vld [vmem:[%s3846_s2 + $0x20] sm:$0xff] (!%p175_p9)  ;;  %v228_v11 = vld [vmem:[%s3846_s2 + $0x30] sm:$0xff] (!%p175_p9)  ;;  %v231_v12 = vld [vmem:[%s3846_s2 + $0x48] sm:$0xff] (!%p175_p9)  ;;  %s2643_s27 = smov (!%p175_p9), 80   ;;  %s2644_s28 = smov (!%p175_p9), 64   ;;  %vm1116_vm2 = vcmask (!%p175_p9), 261120  }
  0x10   : > { %2248 = vmatprep.subr.bf16.mxu0 (!%p175_p9), %v2247_v3  ;;  %v233_v13 = vld [vmem:[%s3846_s2 + $0x58] sm:$0xff] (!%p175_p9)  ;;  %v2253_v14 = vpack.c.bf16 (!%p175_p9), %v228_v11, %v226_v10  ;;  %v230_v16 = vld [vmem:[%s3846_s2 + $0x40] sm:$0xff] (!%p175_p9)  ;;  %v232_v17 = vld [vmem:[%s3846_s2 + $0x50] sm:$0xff] (!%p175_p9)  ;;  %s2645_s29 = smov (!%p175_p9), 48   ;;  %s2646_s30 = smov (!%p175_p9), 32   ;;  %vm1118_vm3 = vcmask (!%p175_p9), 392192  }
  0x11   : > { %2250 = vmatpush1.bf16.msra.mxu0 (!%p175_p9), %v2249_v8  ;;  %v2255_v15 = vpack.c.bf16 (!%p175_p9), %v233_v13, %v231_v12  ;;  %v235_v18 = vld [vmem:[%s3846_s2 + $0x68] sm:$0xff] (!%p175_p9)  ;;  %v237_v19 = vld [vmem:[%s3846_s2 + $0x78] sm:$0xff] (!%p175_p9)  ;;  %v2257_v20 = vpack.c.bf16 (!%p175_p9), %v232_v17, %v230_v16  ;;  %v234_v22 = vld [vmem:[%s3846_s2 + $0x60] sm:$0xff] (!%p175_p9)  ;;  %s2647_s5 = smov (!%p175_p9), 16   ;;  %vm1120_vm4 = vcmask (!%p175_p9), 523264   ;;  %vm1122_vm5 = vcmask (!%p175_p9), 654336  }
  0x12   : > { %2252 = vmatprep.subr.bf16.mxu0 (!%p175_p9), %v2251_v9  ;;  %v2259_v21 = vpack.c.bf16 (!%p175_p9), %v237_v19, %v235_v18  ;;  %v236_v23 = vld [vmem:[%s3846_s2 + $0x70] sm:$0xff] (!%p175_p9)  ;;  %v239_v24 = vld [vmem:[%s3846_s2 + $0x88] sm:$0xff] (!%p175_p9)  ;;  %v241_v25 = vld [vmem:[%s3846_s2 + $0x98] sm:$0xff] (!%p175_p9)  ;;  %vm1124_vm6 = vcmask (!%p175_p9), 785408   ;;  %vm1126_vm7 = vcmask (!%p175_p9), 916480   ;;  %vm2650_vm8 = vmmov (!%p175_p9), 0  }
  0x13   : > { %v459_v26 = vld [vmem:[%s3846_s2 + $0x1d8] sm:$0xff] (!%p175_p9)  ;;  %v461_v27 = vld [vmem:[%s3846_s2 + $0x1e8] sm:$0xff] (!%p175_p9)  ;;  %v458_v29 = vld [vmem:[%s3846_s2 + $0x1d0] sm:$0xff] (!%p175_p9)  ;;  %v2261_v32 = vpack.c.bf16 (!%p175_p9), %v236_v23, %v234_v22  ;;  %v2263_v37 = vpack.c.bf16 (!%p175_p9), %v241_v25, %v239_v24  ;;  %vm1804_vm9 = vcmask (!%p175_p9), 64512   ;;  %s2117_s6 = sshll.u32 (!%p175_p9), %s2698_s19, 7 }
  0x14   : > { %v2267_v28 = vpack.c.bf16 (!%p175_p9), %v461_v27, %v459_v26  ;;  %v460_v30 = vld [vmem:[%s3846_s2 + $0x1e0] sm:$0xff] (!%p175_p9)  ;;  %v463_v31 = vld [vmem:[%s3846_s2 + $0x1f8] sm:$0xff] (!%p175_p9)  ;;  %v465_v34 = vld [vmem:[%s3846_s2 + $0x208] sm:$0xff] (!%p175_p9)  ;;  %s3802_s11 = scalar_lea.hbm (!%p175_p9), %s3848_s4, %s2117_s6 }
  0x15   : > { %2254 = vmatpush1.bf16.msra.mxu0 %v2253_v14  ;;  %s2788_s7 = scalar_select %p204_p10, %s2698_s19, 3  ;;  %v2269_v33 = vpack.c.bf16 %v460_v30, %v458_v29  ;;  %v462_v35 = vld [vmem:[%s3846_s2 + $0x1f0] sm:$0xff]  ;;  %v464_v36 = vld [vmem:[%s3846_s2 + $0x200] sm:$0xff]  ;;  %v2271_v40 = vpack.c.bf16 %v465_v34, %v463_v31  ;;  %v467_v42 = vld [vmem:[%s3846_s2 + $0x218] sm:$0xff] }
  0x16   : > { %2256 = vmatprep.subr.bf16.mxu0 %v2255_v15  ;;  %v238_v38 = vld [vmem:[%s3846_s2 + $0x80] sm:$0xff]  ;;  %v240_v39 = vld [vmem:[%s3846_s2 + $0x90] sm:$0xff]  ;;  %2268 = vmatprep.subr.bf16.mxu1 %v2267_v28  ;;  %v2273_v41 = vpack.c.bf16 %v464_v36, %v462_v35  ;;  %v469_v43 = vld [vmem:[%s3846_s2 + $0x228] sm:$0xff]  ;;  %s2651_s19 = smov [#allocation2]  }
  0x17   : > { %2270 = vmatpush1.bf16.msra.mxu1 %v2269_v33  ;;  %s2519_s12 = smul.u32 72, %s2788_s7  ;;  %v2275_v44 = vpack.c.bf16 %v469_v43, %v467_v42  ;;  %v466_v45 = vld [vmem:[%s3846_s2 + $0x210] sm:$0xff]  ;;  %v468_v46 = vld [vmem:[%s3846_s2 + $0x220] sm:$0xff]  ;;  %v2265_v47 = vpack.c.bf16 %v240_v39, %v238_v38  ;;  %v471_v48 = vld [vmem:[%s3846_s2 + $0x238] sm:$0xff] }
  0x18   : > { %2272 = vmatprep.subr.bf16.mxu1 %v2271_v40  ;;  %v473_v49 = vld [vmem:[%s3846_s2 + $0x248] sm:$0xff]  ;;  %v764_v51 = vld [vmem:[%s3846_s2 + $0x2f8] sm:$0xff]  ;;  %v2277_v53 = vpack.c.bf16 %v468_v46, %v466_v45  ;;  %v763_v54 = vld [vmem:[%s3846_s2 + $0x2f0] sm:$0xff] }
  0x19   : > { %2258 = vmatpush1.bf16.msra.mxu0 %v2257_v20  ;;  %v243_v50 = vld [vmem:[%s3846_s2 + $0xa8] sm:$0xff]  ;;  %s2845_s14 = scalar_lea.vmem %s3844_s0, %s2519_s12  ;;  %v765_v55 = vld [vmem:[%s3846_s2 + $0x300] sm:$0xff]  ;;  %v768_v56 = vld [vmem:[%s3846_s2 + $0x318] sm:$0xff]  ;;  %v2279_v57 = vpack.c.bf16 %v473_v49, %v471_v48  ;;  %s2063_s12 = sshll.u32 %s2788_s7, 3 }
  0x1a   : > { %2260 = vmatprep.subr.bf16.mxu0 %v2259_v21  ;;  %v766_v52 = vld [vmem:[%s3846_s2 + $0x308] sm:$0xff]  ;;  %v470_v59 = vld [vmem:[%s3846_s2 + $0x230] sm:$0xff]  ;;  %v472_v60 = vld [vmem:[%s3846_s2 + $0x240] sm:$0xff]  ;;  %v2877_v2 = vpack.c.bf16 %v765_v55, %v763_v54  ;;  %s212_s9 = scalar_lea.vmem %s3845_s1, %s2063_s12 }
  0x1b   : > { %2274 = vmatpush1.bf16.msra.mxu1 %v2273_v41  ;;  %v770_v58 = vld [vmem:[%s3846_s2 + $0x328] sm:$0xff]  ;;  %v242_v61 = vld [vmem:[%s3846_s2 + $0xa0] sm:$0xff]  ;;  %v2868_v62 = vpack.c.bf16 %v766_v52, %v764_v51  ;;  %v475_v63 = vld [vmem:[%s3846_s2 + $0x258] sm:$0xff]  ;;  %v2281_v6 = vpack.c.bf16 %v472_v60, %v470_v59 }
  0x1c   : > { %2276 = vmatprep.subr.bf16.mxu1 %v2275_v44  ;;  %v477_v0 = vld [vmem:[%s3846_s2 + $0x268] sm:$0xff]  ;;  %v213_v1 = vld [vmem:[%s2845_s14] sm:$0xff]  ;;  %v2879_v3 = vpack.c.bf16 %v770_v58, %v768_v56  ;;  %v767_v4 = vld [vmem:[%s3846_s2 + $0x310] sm:$0xff] }
  0x1d   : > { %2262 = vmatpush1.bf16.msra.mxu0 %v2261_v32  ;;  %v769_v5 = vld [vmem:[%s3846_s2 + $0x320] sm:$0xff]  ;;  %v772_v8 = vld [vmem:[%s3846_s2 + $0x338] sm:$0xff]  ;;  %v774_v9 = vld [vmem:[%s3846_s2 + $0x348] sm:$0xff]  ;;  %v2283_v10 = vpack.c.bf16 %v477_v0, %v475_v63 }
  0x1e   : > { %2264 = vmatprep.subr.bf16.mxu0 %v2263_v37  ;;  %v474_v11 = vld [vmem:[%s3846_s2 + $0x250] sm:$0xff]  ;;  %v476_v12 = vld [vmem:[%s3846_s2 + $0x260] sm:$0xff]  ;;  %v479_v13 = vld [vmem:[%s3846_s2 + $0x278] sm:$0xff]  ;;  %v2910_v16 = vpack.c.bf16 %v769_v5, %v767_v4  ;;  %v2913_v17 = vpack.c.bf16 %v774_v9, %v772_v8 }
  0x1f   : > { %2278 = vmatpush1.bf16.msra.mxu1 %v2277_v53  ;;  %v481_v14 = vld [vmem:[%s3846_s2 + $0x288] sm:$0xff]  ;;  %v771_v18 = vld [vmem:[%s3846_s2 + $0x330] sm:$0xff]  ;;  %v773_v19 = vld [vmem:[%s3846_s2 + $0x340] sm:$0xff]  ;;  %v2285_v20 = vpack.c.bf16 %v476_v12, %v474_v11 }
  0x20   : > { %2280 = vmatprep.subr.bf16.mxu1 %v2279_v57  ;;  %v214_v15 = vld [vmem:[%s2845_s14 + $0x8] sm:$0xff]  ;;  %v776_v21 = vld [vmem:[%s3846_s2 + $0x358] sm:$0xff]  ;;  %v2287_v23 = vpack.c.bf16 %v481_v14, %v479_v13  ;;  %v478_v24 = vld [vmem:[%s3846_s2 + $0x270] sm:$0xff]  ;;  %v2943_v29 = vpack.c.bf16 %v773_v19, %v771_v18 }
  0x21   : > { %2266 = vmatpush1.bf16.msra.mxu0 %v2265_v47  ;;  %v778_v22 = vld [vmem:[%s3846_s2 + $0x368] sm:$0xff]  ;;  %v480_v25 = vld [vmem:[%s3846_s2 + $0x280] sm:$0xff]  ;;  %v483_v26 = vld [vmem:[%s3846_s2 + $0x298] sm:$0xff] }
  0x22   : > { %305 = vmatprep.subr.mxu0 %v243_v50  ;;  %v485_v27 = vld [vmem:[%s3846_s2 + $0x2a8] sm:$0xff]  ;;  %v215_v28 = vld [vmem:[%s2845_s14 + $0x10] sm:$0xff]  ;;  %v2946_v30 = vpack.c.bf16 %v778_v22, %v776_v21  ;;  %v777_v32 = vld [vmem:[%s3846_s2 + $0x360] sm:$0xff]  ;;  %v2289_v33 = vpack.c.bf16 %v480_v25, %v478_v24 }
  0x23   : > { %2282 = vmatpush1.bf16.msra.mxu1 %v2281_v6  ;;  %v775_v31 = vld [vmem:[%s3846_s2 + $0x350] sm:$0xff]  ;;  %v780_v34 = vld [vmem:[%s3846_s2 + $0x378] sm:$0xff]  ;;  %v782_v35 = vld [vmem:[%s3846_s2 + $0x388] sm:$0xff]  ;;  %v2291_v36 = vpack.c.bf16 %v485_v27, %v483_v26 }
  0x24   : > { %2284 = vmatprep.subr.bf16.mxu1 %v2283_v10  ;;  %v482_v37 = vld [vmem:[%s3846_s2 + $0x290] sm:$0xff]  ;;  %v484_v38 = vld [vmem:[%s3846_s2 + $0x2a0] sm:$0xff]  ;;  %v487_v39 = vld [vmem:[%s3846_s2 + $0x2b8] sm:$0xff]  ;;  %v2976_v42 = vpack.c.bf16 %v777_v32, %v775_v31  ;;  %v2979_v43 = vpack.c.bf16 %v782_v35, %v780_v34  ;;  %v247_v34 = vlaneseq }
  0x25   : > { %306 = vmatpush1.msra.mxu0 %v242_v61  ;;  %v489_v40 = vld [vmem:[%s3846_s2 + $0x2c8] sm:$0xff]  ;;  %v216_v41 = vld [vmem:[%s2845_s14 + $0x18] sm:$0xff]  ;;  %v779_v44 = vld [vmem:[%s3846_s2 + $0x370] sm:$0xff]  ;;  %v2293_v46 = vpack.c.bf16 %v484_v38, %v482_v37 }
  0x26   : > { %2065 = vmatmul.mubr.msk.f32.vlgmr.msra.gmra.mrb[0].mxu0 %vm257_vm0, %v213_v1  ;;  %2340 = vmatprep.subr.bf16.mxu0 %v2868_v62  ;;  %v781_v45 = vld [vmem:[%s3846_s2 + $0x380] sm:$0xff]  ;;  %v784_v47 = vld [vmem:[%s3846_s2 + $0x398] sm:$0xff]  ;;  %v786_v48 = vld [vmem:[%s3846_s2 + $0x3a8] sm:$0xff]  ;;  %v2295_v49 = vpack.c.bf16 %v489_v40, %v487_v39  ;;  %v3104_v35 = vshrl.u32 %v247_v34, 7 }
  0x27   : > { %355 = vmatprep.mubr.f32.mxu0 %v2640_v7  ;;  %2342 = vmatpush1.bf16.msra.mxu0 %v2877_v2  ;;  %v486_v50 = vld [vmem:[%s3846_s2 + $0x2b0] sm:$0xff]  ;;  %v488_v51 = vld [vmem:[%s3846_s2 + $0x2c0] sm:$0xff]  ;;  %v3003_v53 = vpack.c.bf16 %v781_v45, %v779_v44  ;;  %v3006_v54 = vpack.c.bf16 %v786_v48, %v784_v47  ;;  %v788_v58 = vld [vmem:[%s3846_s2 + $0x3b8] sm:$0xff] }
  0x28   : > { %2344 = vmatprep.subr.bf16.mxu0 %v2879_v3  ;;  %2286 = vmatpush1.bf16.msra.mxu1 %v2285_v20  ;;  %v217_v52 = vld [vmem:[%s2845_s14 + $0x20] sm:$0xff]  ;;  %v783_v55 = vld [vmem:[%s3846_s2 + $0x390] sm:$0xff]  ;;  %v2297_v57 = vpack.c.bf16 %v488_v51, %v486_v50  ;;  %v790_v59 = vld [vmem:[%s3846_s2 + $0x3c8] sm:$0xff]  ;;  %v253_v38 = vsub.s32 1, %v3104_v35 }
  0x29   : > { %2288 = vmatprep.subr.bf16.mxu1 %v2287_v23  ;;  %v785_v56 = vld [vmem:[%s3846_s2 + $0x3a0] sm:$0xff]  ;;  %v218_v60 = vld [vmem:[%s2845_s14 + $0x28] sm:$0xff]  ;;  %v3027_v63 = vpack.c.bf16 %v790_v59, %v788_v58  ;;  %v219_v0 = vld [vmem:[%s2845_s14 + $0x30] sm:$0xff] }
  0x2a   : > { %2066 = vmatmul.mubr.msk.f32.gmra.mrb[2].mxu0 %vm257_vm0, %v214_v15  ;;  %v3024_v61 = vpack.c.bf16 %v785_v56, %v783_v55  ;;  %v220_v1 = vld [vmem:[%s2845_s14 + $0x38] sm:$0xff]  ;;  %v221_v4 = vld [vmem:[%s2845_s14 + $0x40] sm:$0xff]  ;;  %v787_v5 = vld [vmem:[%s3846_s2 + $0x3b0] sm:$0xff]  ;;  %s2642_s14 = smov 112  }
  0x2b   : > { %361 = vmatprep.mubr.f32.mxu0 %v2640_v7  ;;  %2346 = vmatpush1.bf16.msra.mxu0 %v2910_v16  ;;  %v789_v6 = vld [vmem:[%s3846_s2 + $0x3c0] sm:$0xff]  ;;  %v491_v9 = vld [vmem:[%s3846_s2 + $0x2d8] sm:$0xff]  ;;  %v493_v10 = vld [vmem:[%s3846_s2 + $0x2e8] sm:$0xff] }
  0x2c   : > { %2348 = vmatprep.subr.bf16.mxu0 %v2913_v17  ;;  %2290 = vmatpush1.bf16.msra.mxu1 %v2289_v33  ;;  %v3047_v8 = vpack.c.bf16 %v789_v6, %v787_v5  ;;  %v792_v11 = vld [vmem:[%s3846_s2 + $0x3d8] sm:$0xff]  ;;  %v2299_v12 = vpack.c.bf16 %v493_v10, %v491_v9  ;;  %v490_v13 = vld [vmem:[%s3846_s2 + $0x2d0] sm:$0xff]  ;;  %v492_v14 = vld [vmem:[%s3846_s2 + $0x2e0] sm:$0xff] }
  0x2d   : > { %2292 = vmatprep.subr.bf16.mxu1 %v2291_v36  ;;  %v794_v15 = vld [vmem:[%s3846_s2 + $0x3e8] sm:$0xff]  ;;  %v2301_v18 = vpack.c.bf16 %v492_v14, %v490_v13  ;;  %v791_v20 = vld [vmem:[%s3846_s2 + $0x3d0] sm:$0xff]  ;;  %v793_v21 = vld [vmem:[%s3846_s2 + $0x3e0] sm:$0xff]  ;;  %v3107_v36 = vsub.s32 0, %v3104_v35 }
  0x2e   : > { %2067 = vmatmul.mubr.msk.f32.gmra.mrb[4].mxu0 %vm257_vm0, %v215_v28  ;;  %v3068_v19 = vpack.c.bf16 %v794_v15, %v792_v11  ;;  %v3076_v22 = vpack.c.bf16 %v793_v21, %v791_v20  ;;  %v423_v23 = vld [vmem:[%s3846_s2 + $0xb8] sm:$0xff]  ;;  %v425_v24 = vld [vmem:[%s3846_s2 + $0xc8] sm:$0xff]  ;;  %v795_v31 = vld [vmem:[%s3846_s2 + $0x3f0] sm:$0xff] }
  0x2f   : > { %367 = vmatprep.mubr.f32.mxu0 %v2640_v7  ;;  %2350 = vmatpush1.bf16.msra.mxu0 %v2943_v29  ;;  %v796_v25 = vld [vmem:[%s3846_s2 + $0x3f8] sm:$0xff]  ;;  %v2303_v26 = vpack.c.bf16 %v425_v24, %v423_v23  ;;  %v798_v27 = vld [vmem:[%s3846_s2 + $0x408] sm:$0xff]  ;;  %v797_v32 = vld [vmem:[%s3846_s2 + $0x400] sm:$0xff] }
  0x30   : > { %2352 = vmatprep.subr.bf16.mxu0 %v2946_v30  ;;  %2294 = vmatpush1.bf16.msra.mxu1 %v2293_v46  ;;  %v3092_v28 = vpack.c.bf16 %v798_v27, %v796_v25  ;;  %v3100_v33 = vpack.c.bf16 %v797_v32, %v795_v31  ;;  %v2064_v37 = vld [vmem:[%s3846_s2 + $0x530] ss:$8 sm:$0x3]  ;;  %v424_v47 = vld [vmem:[%s3846_s2 + $0xc0] sm:$0xff]  ;;  %v429_v50 = vld [vmem:[%s3846_s2 + $0xe8] sm:$0xff] }
  0x31   : > { %2296 = vmatprep.subr.bf16.mxu1 %v2295_v49  ;;  %v3114_v39 = vrot.slane %v2064_v37, %v3107_v36  ;;  %v3116_v40 = vrot.slane %v2064_v37, %v253_v38  ;;  %v422_v46 = vld [vmem:[%s3846_s2 + $0xb0] sm:$0xff]  ;;  %v427_v49 = vld [vmem:[%s3846_s2 + $0xd8] sm:$0xff]  ;;  %v433_v5 = vld [vmem:[%s3846_s2 + $0x108] sm:$0xff] }
  0x32   : > { %2068 = vmatmul.mubr.msk.f32.gmra.mrb[6].mxu0 %vm257_vm0, %v216_v41  ;;  %v2305_v55 = vpack.c.bf16 %v424_v47, %v422_v46  ;;  %v2307_v59 = vpack.c.bf16 %v429_v50, %v427_v49  ;;  %v430_v15 = vld [vmem:[%s3846_s2 + $0xf0] sm:$0xff]  ;;  %v435_v21 = vld [vmem:[%s3846_s2 + $0x118] sm:$0xff]  ;;  %v437_v23 = vld [vmem:[%s3846_s2 + $0x128] sm:$0xff] }
  0x33   : > { %373 = vmatprep.mubr.f32.mxu0 %v2640_v7  ;;  %2354 = vmatpush1.bf16.msra.mxu0 %v2976_v42  ;;  %v2315_v34 = vpack.c.bf16 %v437_v23, %v435_v21  ;;  %v434_v37 = vld [vmem:[%s3846_s2 + $0x110] sm:$0xff]  ;;  %v436_v38 = vld [vmem:[%s3846_s2 + $0x120] sm:$0xff]  ;;  %v441_v46 = vld [vmem:[%s3846_s2 + $0x148] sm:$0xff] }
  0x34   : > { %2356 = vmatprep.subr.bf16.mxu0 %v2979_v43  ;;  %2298 = vmatpush1.bf16.msra.mxu1 %v2297_v57  ;;  %v2317_v50 = vpack.c.bf16 %v436_v38, %v434_v37  ;;  %v447_v23 = vld [vmem:[%s3846_s2 + $0x178] sm:$0xff] }
  0x35   : > { %2300 = vmatprep.subr.bf16.mxu1 %v2299_v12 }
  0x36   : > { %2069 = vmatmul.mubr.msk.f32.gmra.mrb[8].mxu0 %vm257_vm0, %v217_v52 }
  0x37   : > { %379 = vmatprep.mubr.f32.mxu0 %v2640_v7  ;;  %2358 = vmatpush1.bf16.msra.mxu0 %v3003_v53 }
  0x38   : > { %2360 = vmatprep.subr.bf16.mxu0 %v3006_v54  ;;  %2302 = vmatpush1.bf16.msra.mxu1 %v2301_v18  ;;  %v432_v18 = vld [vmem:[%s3846_s2 + $0x100] sm:$0xff] }
  0x39   : > { %2304 = vmatprep.subr.bf16.mxu1 %v2303_v26  ;;  %v2313_v26 = vpack.c.bf16 %v432_v18, %v430_v15  ;;  %v442_v18 = vld [vmem:[%s3846_s2 + $0x150] sm:$0xff] }
  0x3a   : > { %2070 = vmatmul.mubr.msk.f32.gmra.mrb[10].mxu0 %vm257_vm0, %v218_v60  ;;  %v426_v60 = vld [vmem:[%s3846_s2 + $0xd0] sm:$0xff] }
  0x3b   : > { %385 = vmatprep.mubr.f32.mxu0 %v2640_v7  ;;  %2362 = vmatpush1.bf16.msra.mxu0 %v3024_v61 }
  0x3c   : > { %2364 = vmatprep.subr.bf16.mxu0 %v3027_v63 }
  0x3e   : > { %2071 = vmatmul.mubr.msk.f32.gmra.mrb[12].mxu0 %vm257_vm0, %v219_v0  ;;  %v428_v0 = vld [vmem:[%s3846_s2 + $0xe0] sm:$0xff] }
  0x3f   : > { %391 = vmatprep.mubr.f32.mxu0 %v2640_v7  ;;  %2366 = vmatpush1.bf16.msra.mxu0 %v3047_v8  ;;  %v2309_v10 = vpack.c.bf16 %v428_v0, %v426_v60  ;;  %v440_v60 = vld [vmem:[%s3846_s2 + $0x140] sm:$0xff] }
  0x40   : > { %2368 = vmatprep.subr.bf16.mxu0 %v3068_v19 }
  0x42   : > { %2072 = vmatmul.mubr.msk.f32.gmra.mrb[14].mxu0 %vm257_vm0, %v220_v1 }
  0x43   : > { %397 = vmatprep.mubr.f32.mxu0 %v2640_v7  ;;  %2370 = vmatpush1.bf16.msra.mxu0 %v3076_v22 }
  0x44   : > { %2372 = vmatprep.subr.bf16.mxu0 %v3092_v28 }
  0x46   : > { %2073 = vmatmul.mubr.msk.f32.gmra.mrb[16].mxu0 %vm257_vm0, %v221_v4  ;;  %v431_v4 = vld [vmem:[%s3846_s2 + $0xf8] sm:$0xff] }
  0x47   : > { %2374 = vmatpush1.bf16.msra.mxu0 %v3100_v33  ;;  %v2311_v14 = vpack.c.bf16 %v433_v5, %v431_v4  ;;  %v445_v4 = vld [vmem:[%s3846_s2 + $0x168] sm:$0xff] }
  0xf9   : > { %v351_v41 = vpop.f32.mrb[0].mxu0 }
  0xfa   : > { %v3119_v44 = vadd.f32 %v351_v41, %v3114_v39  ;;  %v353_v45 = vpop.f32.mrb[1].mxu0 }
  0xfb   : > { %v3128_v48 = vadd.f32 %v353_v45, %v3116_v40  ;;  %v439_v45 = vld [vmem:[%s3846_s2 + $0x138] sm:$0xff] }
  0xfc   : > { %v404_v56 = vmax.f32 %v3119_v44, 0.0 }
  0xfd   : > { %v405_v51 = vmax.f32 %v3128_v48, 0.0  ;;  %v357_v52 = vpop.f32.mrb[2].mxu0 }
  0xfe   : > { %v358_v57 = vadd.f32 %v357_v52, %v3114_v39  ;;  %v359_v58 = vpop.f32.mrb[3].mxu0 }
  0xff   : > { %v360_v1 = vadd.f32 %v359_v58, %v3116_v40  ;;  %2074 = vmatprep.mubr.msk.f32.mxu1 %vm494_vm1, %v405_v51  ;;  %v2319_v58 = vpack.c.bf16 %v441_v46, %v439_v45  ;;  %v446_v45 = vld [vmem:[%s3846_s2 + $0x170] sm:$0xff]  ;;  %v448_v46 = vld [vmem:[%s3846_s2 + $0x180] sm:$0xff] }
 0x100   : > { %587 = vmatmul.mubr.f32.vlgmr.msra.gmra.mrb[0].mxu1 %v404_v56  ;;  %v3159_v11 = vmax.f32 %v358_v57, 0.0 }
 0x101   : > { %v3157_v6 = vmax.f32 %v360_v1, 0.0  ;;  %2306 = vmatpush1.bf16.msra.mxu1 %v2305_v55  ;;  %v363_v9 = vpop.f32.mrb[4].mxu0  ;;  %v443_v1 = vld [vmem:[%s3846_s2 + $0x158] sm:$0xff] }
 0x102   : > { %v364_v12 = vadd.f32 %v363_v9, %v3114_v39  ;;  %v365_v13 = vpop.f32.mrb[5].mxu0  ;;  %2308 = vmatprep.subr.bf16.mxu1 %v2307_v59  ;;  %v438_v59 = vld [vmem:[%s3846_s2 + $0x130] sm:$0xff]  ;;  %v2323_v15 = vpack.c.bf16 %v445_v4, %v443_v1 }
 0x103   : > { %v366_v20 = vadd.f32 %v365_v13, %v3116_v40  ;;  %2075 = vmatprep.mubr.msk.f32.mxu1 %vm494_vm1, %v3157_v6  ;;  %2091 = vmatprep.mubr.msk.f32.mxu0 %vm494_vm1, %v3157_v6 }
 0x104   : > { %593 = vmatmul.mubr.f32.gmra.mrb[2].mxu1 %v3159_v11  ;;  %864 = vmatmul.mubr.f32.vlgmr.msra.gmra.mrb[18].mxu0 %v3159_v11  ;;  %v3184_v27 = vmax.f32 %v364_v12, 0.0 }
 0x105   : > { %v3181_v24 = vmax.f32 %v366_v20, 0.0  ;;  %2310 = vmatpush1.bf16.msra.mxu1 %v2309_v10  ;;  %v369_v25 = vpop.f32.mrb[6].mxu0  ;;  %1388 = vmatprep.mubr.f32.mxu0 %v2640_v7  ;;  %v2321_v10 = vpack.c.bf16 %v440_v60, %v438_v59  ;;  %v444_v20 = vld [vmem:[%s3846_s2 + $0x160] sm:$0xff]  ;;  %v2329_v59 = vpack.c.bf16 %v448_v46, %v446_v45 }
 0x106   : > { %v370_v31 = vadd.f32 %v369_v25, %v3114_v39  ;;  %v371_v32 = vpop.f32.mrb[7].mxu0  ;;  %2312 = vmatprep.subr.bf16.mxu1 %v2311_v14  ;;  %v449_v25 = vld [vmem:[%s3846_s2 + $0x188] sm:$0xff] }
 0x107   : > { %v372_v41 = vadd.f32 %v371_v32, %v3116_v40  ;;  %2076 = vmatprep.mubr.msk.f32.mxu1 %vm494_vm1, %v3181_v24  ;;  %v2325_v32 = vpack.c.bf16 %v444_v20, %v442_v18 }
 0x108   : > { %599 = vmatmul.mubr.f32.gmra.mrb[4].mxu1 %v3184_v27  ;;  %v3205_v52 = vmax.f32 %v370_v31, 0.0 }
 0x109   : > { %v3203_v47 = vmax.f32 %v372_v41, 0.0  ;;  %2314 = vmatpush1.bf16.msra.mxu1 %v2313_v26  ;;  %v375_v49 = vpop.f32.mrb[8].mxu0  ;;  %v2327_v41 = vpack.c.bf16 %v449_v25, %v447_v23 }
 0x10a   : > { %v376_v55 = vadd.f32 %v375_v49, %v3114_v39  ;;  %v377_v57 = vpop.f32.mrb[9].mxu0  ;;  %2316 = vmatprep.subr.bf16.mxu1 %v2315_v34 }
 0x10b   : > { %v378_v0 = vadd.f32 %v377_v57, %v3116_v40  ;;  %2077 = vmatprep.mubr.msk.f32.mxu1 %vm494_vm1, %v3203_v47 }
 0x10c   : > { %605 = vmatmul.mubr.f32.gmra.mrb[6].mxu1 %v3205_v52  ;;  %v3226_v12 = vmax.f32 %v376_v55, 0.0  ;;  %v453_v55 = vld [vmem:[%s3846_s2 + $0x1a8] sm:$0xff] }
 0x10d   : > { %v3224_v5 = vmax.f32 %v378_v0, 0.0  ;;  %2318 = vmatpush1.bf16.msra.mxu1 %v2317_v50  ;;  %v381_v9 = vpop.f32.mrb[10].mxu0  ;;  %v451_v50 = vld [vmem:[%s3846_s2 + $0x198] sm:$0xff] }
 0x10e   : > { %v382_v13 = vadd.f32 %v381_v9, %v3114_v39  ;;  %v383_v14 = vpop.f32.mrb[11].mxu0  ;;  %2320 = vmatprep.subr.bf16.mxu1 %v2319_v58  ;;  %v2331_v4 = vpack.c.bf16 %v453_v55, %v451_v50  ;;  %v450_v9 = vld [vmem:[%s3846_s2 + $0x190] sm:$0xff] }
 0x10f   : > { %v384_v21 = vadd.f32 %v383_v14, %v3116_v40  ;;  %2078 = vmatprep.mubr.msk.f32.mxu1 %vm494_vm1, %v3224_v5  ;;  %v455_v14 = vld [vmem:[%s3846_s2 + $0x1b8] sm:$0xff] }
 0x110   : > { %611 = vmatmul.mubr.f32.gmra.mrb[8].mxu1 %v3226_v12  ;;  %v3247_v34 = vmax.f32 %v382_v13, 0.0 }
 0x111   : > { %v3245_v26 = vmax.f32 %v384_v21, 0.0  ;;  %2322 = vmatpush1.bf16.msra.mxu1 %v2321_v10  ;;  %v387_v31 = vpop.f32.mrb[12].mxu0  ;;  %v452_v10 = vld [vmem:[%s3846_s2 + $0x1a0] sm:$0xff] }
 0x112   : > { %v388_v37 = vadd.f32 %v387_v31, %v3114_v39  ;;  %v389_v38 = vpop.f32.mrb[13].mxu0  ;;  %2324 = vmatprep.subr.bf16.mxu1 %v2323_v15  ;;  %v457_v15 = vld [vmem:[%s3846_s2 + $0x1c8] sm:$0xff]  ;;  %v2333_v21 = vpack.c.bf16 %v452_v10, %v450_v9 }
 0x113   : > { %v390_v49 = vadd.f32 %v389_v38, %v3116_v40  ;;  %2079 = vmatprep.mubr.msk.f32.mxu1 %vm494_vm1, %v3245_v26  ;;  %v456_v38 = vld [vmem:[%s3846_s2 + $0x1c0] sm:$0xff] }
 0x114   : > { %617 = vmatmul.mubr.f32.gmra.mrb[10].mxu1 %v3247_v34  ;;  %v3268_v60 = vmax.f32 %v388_v37, 0.0  ;;  %v454_v37 = vld [vmem:[%s3846_s2 + $0x1b0] sm:$0xff] }
 0x115   : > { %v3266_v57 = vmax.f32 %v390_v49, 0.0  ;;  %2326 = vmatpush1.bf16.msra.mxu1 %v2325_v32  ;;  %v393_v58 = vpop.f32.mrb[14].mxu0  ;;  %v2335_v32 = vpack.c.bf16 %v457_v15, %v455_v14  ;;  %v2337_v45 = vpack.c.bf16 %v456_v38, %v454_v37 }
 0x116   : > { %v394_v0 = vadd.f32 %v393_v58, %v3114_v39  ;;  %v395_v1 = vpop.f32.mrb[15].mxu0  ;;  %2328 = vmatprep.subr.bf16.mxu1 %v2327_v41 }
 0x117   : > { %v396_v13 = vadd.f32 %v395_v1, %v3116_v40  ;;  %2080 = vmatprep.mubr.msk.f32.mxu1 %vm494_vm1, %v3266_v57 }
 0x118   : > { %623 = vmatmul.mubr.f32.gmra.mrb[12].mxu1 %v3268_v60  ;;  %v3289_v23 = vmax.f32 %v394_v0, 0.0 }
 0x119   : > { %v3287_v18 = vmax.f32 %v396_v13, 0.0  ;;  %2330 = vmatpush1.bf16.msra.mxu1 %v2329_v59  ;;  %v399_v20 = vpop.f32.mrb[16].mxu0 }
 0x11a   : > { %v3292_v25 = vadd.f32 %v399_v20, %v3114_v39  ;;  %v401_v31 = vpop.f32.mrb[17].mxu0  ;;  %2332 = vmatprep.subr.bf16.mxu1 %v2331_v4 }
 0x11b   : > { %v402_v41 = vadd.f32 %v401_v31, %v3116_v40  ;;  %2081 = vmatprep.mubr.msk.f32.mxu1 %vm494_vm1, %v3287_v18 }
 0x11c   : > { %629 = vmatmul.mubr.f32.gmra.mrb[14].mxu1 %v3289_v23  ;;  %v420_v46 = vmax.f32 %v3292_v25, 0.0 }
 0x11d   : > { %v421_v39 = vmax.f32 %v402_v41, 0.0  ;;  %2334 = vmatpush1.bf16.msra.mxu1 %v2333_v21 }
 0x11e   : > { %2336 = vmatprep.subr.bf16.mxu1 %v2335_v32 }
 0x11f   : > { %2082 = vmatprep.mubr.msk.f32.mxu1 %vm494_vm1, %v421_v39 }
 0x120   : > { %635 = vmatmul.mubr.f32.gmra.mrb[16].mxu1 %v420_v46 }
 0x121   : > { %2338 = vmatpush1.bf16.msra.mxu1 %v2337_v45  ;;  %708 = vmatprep.mubr.f32.mxu1 %v2640_v7 }
 0x122   : > { %2465 = vmatprep.subr.bf16.mxu1 %v2868_v62 }
 0x124   : > { %709 = vmatmul.mubr.f32.vlgmr.msra.gmra.mrb[0].mxu1 %v2640_v7 }
 0x125   : > { %2474 = vmatpush1.bf16.msra.mxu1 %v2877_v2  ;;  %2083 = vmatprep.mubr.msk.f32.mxu1 %vm494_vm1, %v405_v51 }
 0x126   : > { %2466 = vmatprep.subr.bf16.mxu1 %v2879_v3 }
 0x128   : > { %715 = vmatmul.mubr.f32.gmra.mrb[2].mxu1 %v404_v56 }
 0x129   : > { %2475 = vmatpush1.bf16.msra.mxu1 %v2910_v16  ;;  %2084 = vmatprep.mubr.msk.f32.mxu1 %vm494_vm1, %v3157_v6 }
 0x12a   : > { %2467 = vmatprep.subr.bf16.mxu1 %v2913_v17 }
 0x12c   : > { %721 = vmatmul.mubr.f32.gmra.mrb[4].mxu1 %v3159_v11 }
 0x12d   : > { %2476 = vmatpush1.bf16.msra.mxu1 %v2943_v29  ;;  %2085 = vmatprep.mubr.msk.f32.mxu1 %vm494_vm1, %v3181_v24 }
 0x12e   : > { %2468 = vmatprep.subr.bf16.mxu1 %v2946_v30 }
 0x130   : > { %727 = vmatmul.mubr.f32.gmra.mrb[6].mxu1 %v3184_v27 }
 0x131   : > { %2477 = vmatpush1.bf16.msra.mxu1 %v2976_v42  ;;  %2086 = vmatprep.mubr.msk.f32.mxu1 %vm494_vm1, %v3203_v47 }
 0x132   : > { %2469 = vmatprep.subr.bf16.mxu1 %v2979_v43 }
 0x134   : > { %733 = vmatmul.mubr.f32.gmra.mrb[8].mxu1 %v3205_v52 }
 0x135   : > { %2478 = vmatpush1.bf16.msra.mxu1 %v3003_v53  ;;  %2087 = vmatprep.mubr.msk.f32.mxu1 %vm494_vm1, %v3224_v5 }
 0x136   : > { %2470 = vmatprep.subr.bf16.mxu1 %v3006_v54 }
 0x138   : > { %739 = vmatmul.mubr.f32.gmra.mrb[10].mxu1 %v3226_v12 }
 0x139   : > { %2479 = vmatpush1.bf16.msra.mxu1 %v3024_v61  ;;  %2088 = vmatprep.mubr.msk.f32.mxu1 %vm494_vm1, %v3245_v26 }
 0x13a   : > { %2471 = vmatprep.subr.bf16.mxu1 %v3027_v63 }
 0x13c   : > { %745 = vmatmul.mubr.f32.gmra.mrb[12].mxu1 %v3247_v34 }
 0x13d   : > { %2480 = vmatpush1.bf16.msra.mxu1 %v3047_v8  ;;  %2089 = vmatprep.mubr.msk.f32.mxu1 %vm494_vm1, %v3266_v57 }
 0x13e   : > { %2472 = vmatprep.subr.bf16.mxu1 %v3068_v19 }
 0x140   : > { %751 = vmatmul.mubr.f32.gmra.mrb[14].mxu1 %v3268_v60 }
 0x141   : > { %2481 = vmatpush1.bf16.msra.mxu1 %v3076_v22  ;;  %2090 = vmatprep.mubr.msk.f32.mxu1 %vm494_vm1, %v3287_v18 }
 0x142   : > { %2473 = vmatprep.subr.bf16.mxu1 %v3092_v28 }
 0x144   : > { %757 = vmatmul.mubr.f32.gmra.mrb[16].mxu1 %v3289_v23 }
 0x145   : > { %2482 = vmatpush1.bf16.msra.mxu1 %v3100_v33  ;;  %2092 = vmatprep.mubr.msk.f32.mxu1 %vm494_vm1, %v3181_v24 }
 0x148   : > { %870 = vmatmul.mubr.f32.vlgmr.msra.gmra.mrb[2].mxu1 %v3184_v27 }
 0x149   : > { %2093 = vmatprep.mubr.msk.f32.mxu1 %vm494_vm1, %v3203_v47 }
 0x14c   : > { %876 = vmatmul.mubr.f32.gmra.mrb[4].mxu1 %v3205_v52 }
 0x14d   : > { %2094 = vmatprep.mubr.msk.f32.mxu1 %vm494_vm1, %v3224_v5 }
 0x150   : > { %882 = vmatmul.mubr.f32.gmra.mrb[6].mxu1 %v3226_v12 }
 0x151   : > { %2095 = vmatprep.mubr.msk.f32.mxu1 %vm494_vm1, %v3245_v26 }
 0x154   : > { %888 = vmatmul.mubr.f32.gmra.mrb[8].mxu1 %v3247_v34 }
 0x155   : > { %2096 = vmatprep.mubr.msk.f32.mxu1 %vm494_vm1, %v3266_v57 }
 0x158   : > { %894 = vmatmul.mubr.f32.gmra.mrb[10].mxu1 %v3268_v60 }
 0x159   : > { %2097 = vmatprep.mubr.msk.f32.mxu1 %vm494_vm1, %v3287_v18 }
 0x15c   : > { %900 = vmatmul.mubr.f32.gmra.mrb[12].mxu1 %v3289_v23 }
 0x15d   : > { %2098 = vmatprep.mubr.msk.f32.mxu1 %vm494_vm1, %v421_v39 }
 0x160   : > { %906 = vmatmul.mubr.f32.gmra.mrb[14].mxu1 %v420_v46 }
 0x161   : > { %911 = vmatprep.mubr.f32.mxu1 %v2640_v7 }
 0x164   : > { %912 = vmatmul.mubr.f32.gmra.mrb[16].mxu1 %v2640_v7 }
 0x165   : > { %2244 = vmatprep.mubr.msk.f32.mxu1 %vm2650_vm8, %v2640_v7 }
 0x1d7   : > { %v865_v62 = vpop.f32.mrb[18].mxu0 }
 0x1d8   : > { %v867_v2 = vpop.f32.mrb[19].mxu0 }
 0x1f7   : > { %v710_v3 = vpop.f32.mrb[0].mxu1 }
 0x1f8   : > { %v3373_v16 = vadd.f32 %v865_v62, %v710_v3  ;;  %v712_v17 = vpop.f32.mrb[1].mxu1 }
 0x1f9   : > { %v2484_v29 = vadd.f32 %v867_v2, %v712_v17 }
 0x1fa   : > { %v973_v8 = vmul.f32 %v3373_v16, %v3373_v16 }
 0x1fb   : > { %v974_v30 = vmul.f32 %v2484_v29, %v2484_v29  ;;  %v950_v54 = vsel %vm494_vm1, %v2484_v29, 0.0 }
 0x1fd   : > { %v1005_v28 = vsel %vm494_vm1, %v974_v30, 0.0 }
 0x21b   : > { %v3375_v42 = vpop.f32.mrb[2].mxu1 }
 0x21c   : > { %v975_v43 = vmul.f32 %v3375_v42, %v3375_v42  ;;  %v873_v53 = vpop.f32.mrb[3].mxu1  ;;  %v936_v19 = vadd.f32 %v3373_v16, %v3375_v42 }
 0x21d   : > { %v951_v61 = vsel %vm494_vm1, %v873_v53, 0.0  ;;  %v976_v63 = vmul.f32 %v873_v53, %v873_v53 }
 0x21e   : > { %v952_v22 = vadd.f32 %v951_v61, %v950_v54  ;;  %v991_v44 = vadd.f32 %v975_v43, %v973_v8 }
 0x21f   : > { %v1006_v33 = vsel %vm494_vm1, %v976_v63, 0.0  ;;  %v3387_v40 = vpop.f32.mrb[4].mxu1 }
 0x220   : > { %v1007_v48 = vadd.f32 %v1006_v33, %v1005_v28  ;;  %v937_v51 = vadd.f32 %v936_v19, %v3387_v40  ;;  %v977_v56 = vmul.f32 %v3387_v40, %v3387_v40  ;;  %v879_v6 = vpop.f32.mrb[5].mxu1 }
 0x221   : > { %v953_v11 = vsel %vm494_vm1, %v879_v6, 0.0  ;;  %v978_v24 = vmul.f32 %v879_v6, %v879_v6 }
 0x222   : > { %v992_v27 = vadd.f32 %v991_v44, %v977_v56  ;;  %v954_v47 = vadd.f32 %v953_v11, %v952_v22 }
 0x223   : > { %v1008_v52 = vsel %vm494_vm1, %v978_v24, 0.0  ;;  %v3394_v5 = vpop.f32.mrb[6].mxu1 }
 0x224   : > { %v1009_v12 = vadd.f32 %v1008_v52, %v1007_v48  ;;  %v938_v26 = vadd.f32 %v937_v51, %v3394_v5  ;;  %v979_v34 = vmul.f32 %v3394_v5, %v3394_v5  ;;  %v885_v49 = vpop.f32.mrb[7].mxu1 }
 0x225   : > { %v955_v50 = vsel %vm494_vm1, %v885_v49, 0.0  ;;  %v980_v55 = vmul.f32 %v885_v49, %v885_v49 }
 0x226   : > { %v993_v57 = vadd.f32 %v992_v27, %v979_v34  ;;  %v956_v58 = vadd.f32 %v955_v50, %v954_v47 }
 0x227   : > { %v1010_v59 = vsel %vm494_vm1, %v980_v55, 0.0  ;;  %v3401_v60 = vpop.f32.mrb[8].mxu1 }
 0x228   : > { %v1011_v0 = vadd.f32 %v1010_v59, %v1009_v12  ;;  %v939_v1 = vadd.f32 %v938_v26, %v3401_v60  ;;  %v981_v4 = vmul.f32 %v3401_v60, %v3401_v60  ;;  %v891_v9 = vpop.f32.mrb[9].mxu1 }
 0x229   : > { %v957_v10 = vsel %vm494_vm1, %v891_v9, 0.0  ;;  %v982_v13 = vmul.f32 %v891_v9, %v891_v9 }
 0x22a   : > { %v994_v14 = vadd.f32 %v993_v57, %v981_v4  ;;  %v958_v15 = vadd.f32 %v957_v10, %v956_v58 }
 0x22b   : > { %v1012_v18 = vsel %vm494_vm1, %v982_v13, 0.0  ;;  %v3408_v20 = vpop.f32.mrb[10].mxu1 }
 0x22c   : > { %v1013_v21 = vadd.f32 %v1012_v18, %v1011_v0  ;;  %v940_v23 = vadd.f32 %v939_v1, %v3408_v20  ;;  %v983_v25 = vmul.f32 %v3408_v20, %v3408_v20  ;;  %v897_v31 = vpop.f32.mrb[11].mxu1 }
 0x22d   : > { %v959_v32 = vsel %vm494_vm1, %v897_v31, 0.0  ;;  %v984_v37 = vmul.f32 %v897_v31, %v897_v31 }
 0x22e   : > { %v995_v38 = vadd.f32 %v994_v14, %v983_v25  ;;  %v960_v41 = vadd.f32 %v959_v32, %v958_v15 }
 0x22f   : > { %v1014_v39 = vsel %vm494_vm1, %v984_v37, 0.0  ;;  %v3415_v45 = vpop.f32.mrb[12].mxu1 }
 0x230   : > { %v1015_v46 = vadd.f32 %v1014_v39, %v1013_v21  ;;  %v941_v62 = vadd.f32 %v940_v23, %v3415_v45  ;;  %v985_v2 = vmul.f32 %v3415_v45, %v3415_v45  ;;  %v903_v3 = vpop.f32.mrb[13].mxu1 }
 0x231   : > { %v961_v17 = vsel %vm494_vm1, %v903_v3, 0.0  ;;  %v986_v29 = vmul.f32 %v903_v3, %v903_v3 }
 0x232   : > { %v996_v30 = vadd.f32 %v995_v38, %v985_v2  ;;  %v962_v43 = vadd.f32 %v961_v17, %v960_v41 }
 0x233   : > { %v1016_v53 = vsel %vm494_vm1, %v986_v29, 0.0  ;;  %v3422_v54 = vpop.f32.mrb[14].mxu1 }
 0x234   : > { %v1017_v61 = vadd.f32 %v1016_v53, %v1015_v46  ;;  %v942_v63 = vadd.f32 %v941_v62, %v3422_v54  ;;  %v987_v8 = vmul.f32 %v3422_v54, %v3422_v54  ;;  %v909_v19 = vpop.f32.mrb[15].mxu1 }
 0x235   : > { %v963_v22 = vsel %vm494_vm1, %v909_v19, 0.0  ;;  %v988_v28 = vmul.f32 %v909_v19, %v909_v19 }
 0x236   : > { %v997_v33 = vadd.f32 %v996_v30, %v987_v8  ;;  %v964_v44 = vadd.f32 %v963_v22, %v962_v43 }
 0x237   : > { %v1018_v48 = vsel %vm494_vm1, %v988_v28, 0.0  ;;  %v913_v51 = vpop.f32.mrb[16].mxu1 }
 0x238   : > { %v1019_v56 = vadd.f32 %v1018_v48, %v1017_v61  ;;  %v943_v6 = vadd.f32 %v942_v63, %v913_v51  ;;  %v989_v11 = vmul.f32 %v913_v51, %v913_v51  ;;  %v915_v24 = vpop.f32.mrb[17].mxu1 }
 0x239   : > { %v965_v27 = vsel %vm494_vm1, %v915_v24, 0.0  ;;  %v990_v47 = vmul.f32 %v915_v24, %v915_v24 }
 0x23a   : > { %v944_v52 = vrot.slane %v943_v6, 4  ;;  %v998_v12 = vadd.f32 %v997_v33, %v989_v11  ;;  %v966_v26 = vadd.f32 %v965_v27, %v964_v44 }
 0x23b   : > { %v1020_v34 = vsel %vm494_vm1, %v990_v47, 0.0 }
 0x23c   : > { %v945_v49 = vadd.f32 %v944_v52, %v943_v6  ;;  %v999_v50 = vrot.slane %v998_v12, 4  ;;  %v1021_v55 = vadd.f32 %v1020_v34, %v1019_v56  ;;  %v967_v23 = vrot.slane %v966_v26, 4 }
 0x23e   : > { %v946_v57 = vrot.slane %v945_v49, 2  ;;  %v1000_v58 = vadd.f32 %v999_v50, %v998_v12  ;;  %v1022_v25 = vrot.slane %v1021_v55, 4  ;;  %v968_v37 = vadd.f32 %v967_v23, %v966_v26 }
 0x240   : > { %v947_v59 = vadd.f32 %v946_v57, %v945_v49  ;;  %v1001_v0 = vrot.slane %v1000_v58, 2  ;;  %v1023_v38 = vadd.f32 %v1022_v25, %v1021_v55  ;;  %v969_v62 = vrot.slane %v968_v37, 2 }
 0x242   : > { %v948_v1 = vrot.slane %v947_v59, 1  ;;  %v1002_v4 = vadd.f32 %v1001_v0, %v1000_v58  ;;  %v1024_v17 = vrot.slane %v1023_v38, 2  ;;  %v970_v8 = vadd.f32 %v969_v62, %v968_v37 }
 0x243   : > { %v2648_v62 = vmov 1966171168  }
 0x244   : > { %v949_v9 = vadd.f32 %v948_v1, %v947_v59  ;;  %v1003_v10 = vrot.slane %v1002_v4, 1  ;;  %v1025_v63 = vadd.f32 %v1024_v17, %v1023_v38  ;;  %v971_v56 = vrot.slane %v970_v8, 1 }
 0x246   : > { %1038 = vrot.lane.b32.xlu1 %v949_v9, %s2641_s23  ;;  %1029 = vrot.lane.b32.xlu0 %v949_v9, %s2642_s14  ;;  %v1004_v13 = vadd.f32 %v1003_v10, %v1002_v4  ;;  %v1026_v51 = vrot.slane %v1025_v63, 1  ;;  %v972_v12 = vadd.f32 %v971_v56, %v970_v8  ;;  %v2099_v56 = vld [vmem:[%s3846_s2 + $0x531] ss:$8 sm:$0x3] }
 0x248   : > { %v1027_v47 = vadd.f32 %v1026_v51, %v1025_v63 }
 0x24a   : > { %1042 = vrot.lane.b32.xlu1 %v1004_v13, %s2641_s23  ;;  %1046 = vrot.lane.b32.xlu0 %v949_v9, %s2643_s27 }
 0x24e   : > { %1050 = vrot.lane.b32.xlu1 %v1004_v13, %s2643_s27  ;;  %1054 = vrot.lane.b32.xlu0 %v949_v9, %s2644_s28 }
 0x252   : > { %1058 = vrot.lane.b32.xlu1 %v1004_v13, %s2644_s28  ;;  %1034 = vrot.lane.b32.xlu0 %v1004_v13, %s2642_s14 }
 0x256   : > { %1066 = vrot.lane.b32.xlu1 %v1004_v13, %s2645_s29  ;;  %1062 = vrot.lane.b32.xlu0 %v949_v9, %s2645_s29 }
 0x25a   : > { %1074 = vrot.lane.b32.xlu1 %v1004_v13, %s2646_s30  ;;  %1070 = vrot.lane.b32.xlu0 %v949_v9, %s2646_s30 }
 0x25e   : > { %1082 = vrot.lane.b32.xlu1 %v1004_v13, %s2647_s5  ;;  %1078 = vrot.lane.b32.xlu0 %v949_v9, %s2647_s5 }
 0x2b8   : > { %v1039_v14 = vpop.permute.xlu1 %1038  ;;  %v1030_v15 = vpop.permute.xlu0 %1029 }
 0x2b9   : > { %v1032_v41 = vadd.f32 %v1030_v15, %v949_v9 }
 0x2bb   : > { %v1041_v2 = vadd.f32 %v1039_v14, %v1032_v41 }
 0x2bc   : > { %v1043_v18 = vpop.permute.xlu1 %1042  ;;  %v1047_v21 = vpop.permute.xlu0 %1046 }
 0x2bd   : > { %v1049_v53 = vadd.f32 %v1047_v21, %v1041_v2  ;;  %v1167_v2 = vunpack.c.l.s4 %v2648_v62  ;;  %v1303_v62 = vld [vmem:[%s3846_s2 + $0x470] sm:$0xff] }
 0x2c0   : > { %v1051_v31 = vpop.permute.xlu1 %1050  ;;  %v1055_v32 = vpop.permute.xlu0 %1054 }
 0x2c1   : > { %v1057_v19 = vadd.f32 %v1055_v32, %v1049_v53 }
 0x2c4   : > { %v1059_v39 = vpop.permute.xlu1 %1058  ;;  %v1035_v46 = vpop.permute.xlu0 %1034 }
 0x2c5   : > { %v1037_v3 = vadd.f32 %v1035_v46, %v1004_v13 }
 0x2c7   : > { %v1045_v29 = vadd.f32 %v1043_v18, %v1037_v3 }
 0x2c8   : > { %v1067_v30 = vpop.permute.xlu1 %1066  ;;  %v1063_v43 = vpop.permute.xlu0 %1062 }
 0x2c9   : > { %v1053_v61 = vadd.f32 %v1051_v31, %v1045_v29  ;;  %v1065_v48 = vadd.f32 %v1063_v43, %v1057_v19  ;;  %v1168_v43 = vunpack.c.0.s8 %v1167_v2 }
 0x2cb   : > { %v1061_v22 = vadd.f32 %v1059_v39, %v1053_v61 }
 0x2cc   : > { %v1075_v28 = vpop.permute.xlu1 %1074  ;;  %v1071_v33 = vpop.permute.xlu0 %1070 }
 0x2cd   : > { %v1069_v44 = vadd.f32 %v1067_v30, %v1061_v22  ;;  %v1073_v11 = vadd.f32 %v1071_v33, %v1065_v48  ;;  %v1171_v22 = vsub.s32 %v1168_v43, %v3104_v35 }
 0x2cf   : > { %v1077_v6 = vadd.f32 %v1075_v28, %v1069_v44 }
 0x2d0   : > { %v1083_v24 = vpop.permute.xlu1 %1082  ;;  %v1079_v27 = vpop.permute.xlu0 %1078 }
 0x2d1   : > { %v1085_v52 = vadd.f32 %v1083_v24, %v1077_v6  ;;  %v1081_v26 = vadd.f32 %v1079_v27, %v1073_v11  ;;  %v2100_v24 = vld [vmem:[%s3846_s2 + $0x532] ss:$8 sm:$0x3] }
 0x2d3   : > { %v1087_v34 = vadd.f32 %v1085_v52, %v1027_v47  ;;  %v1086_v49 = vadd.f32 %v1081_v26, %v972_v12  ;;  %v1214_v47 = vrot.slane %v2100_v24, %v3107_v36 }
 0x2d5   : > { %v1089_v50 = vmul.f32 0.0015432099, %v1086_v49  ;;  %v1090_v55 = vmul.f32 0.0015432099, %v1087_v34 }
 0x2d7   : > { %v1091_v57 = vmul.f32 %v1089_v50, %v1089_v50 }
 0x2d9   : > { %v1092_v58 = vsub.f32 %v1090_v55, %v1091_v57 }
 0x2db   : > { %1132 = vrot.lane.b32.xlu1 %v1092_v58, %s2646_s30  ;;  %1129 = vrot.lane.b32.xlu0 %v1092_v58, %s2647_s5  ;;  %v1160_v23 = vadd.f32 1e-05, %v1092_v58 }
 0x2dd   : > { %2570 = vrsqrt.f32 %v1160_v23 }
 0x2df   : > { %1138 = vrot.lane.b32.xlu1 %v1092_v58, %s2644_s28  ;;  %1135 = vrot.lane.b32.xlu0 %v1092_v58, %s2645_s29 }
 0x2e3   : > { %1144 = vrot.lane.b32.xlu1 %v1092_v58, %s2641_s23  ;;  %1141 = vrot.lane.b32.xlu0 %v1092_v58, %s2643_s27 }
 0x2e7   : > { %1094 = vrot.lane.b32.xlu1 %v1089_v50, %s2647_s5  ;;  %1147 = vrot.lane.b32.xlu0 %v1092_v58, %s2642_s14  ;;  %v2571_v19 = vpop.eup %2570 }
 0x2eb   : > { %1100 = vrot.lane.b32.xlu1 %v1089_v50, %s2645_s29  ;;  %1097 = vrot.lane.b32.xlu0 %v1089_v50, %s2646_s30  ;;  %s201_s29 = sand.u32 1, %s2630_s16  }
 0x2ec   : > { %s2061_s12 = sshll.u32 %s201_s29, 3  ;;  %s1973_s13 = scalar_lea.sflag [#allocation3], %s201_s29 }
 0x2ed   : > { %s203_s8 = scalar_lea.vmem [#allocation2], %s2061_s12 }
 0x2ef   : > { %1106 = vrot.lane.b32.xlu1 %v1089_v50, %s2643_s27  ;;  %1103 = vrot.lane.b32.xlu0 %v1089_v50, %s2644_s28 }
 0x2f3   : > { %1112 = vrot.lane.b32.xlu1 %v1089_v50, %s2642_s14  ;;  %1109 = vrot.lane.b32.xlu0 %v1089_v50, %s2641_s23 }
 0x34d   : > { %v1133_v59 = vpop.permute.xlu1 %1132  ;;  %v1130_v0 = vpop.permute.xlu0 %1129 }
 0x34e   : > { %v1150_v1 = vsel %vm494_vm1, %v1092_v58, %v1130_v0 }
 0x34f   : > { %v1151_v9 = vsel %vm1116_vm2, %v1150_v1, %v1133_v59 }
 0x351   : > { %v1139_v4 = vpop.permute.xlu1 %1138  ;;  %v1136_v10 = vpop.permute.xlu0 %1135 }
 0x352   : > { %v1152_v13 = vsel %vm1118_vm3, %v1151_v9, %v1136_v10 }
 0x353   : > { %v1153_v15 = vsel %vm1120_vm4, %v1152_v13, %v1139_v4 }
 0x355   : > { %v1145_v14 = vpop.permute.xlu1 %1144  ;;  %v1142_v18 = vpop.permute.xlu0 %1141 }
 0x356   : > { %v1154_v21 = vsel %vm1122_vm5, %v1153_v15, %v1142_v18 }
 0x357   : > { %v1155_v31 = vsel %vm1124_vm6, %v1154_v21, %v1145_v14 }
 0x359   : > { %v1095_v25 = vpop.permute.xlu1 %1094  ;;  %v1148_v32 = vpop.permute.xlu0 %1147 }
 0x35a   : > { %v1156_v37 = vsel %vm1126_vm7, %v1155_v31, %v1148_v32  ;;  %v1115_v41 = vsel %vm494_vm1, %v1089_v50, %v1095_v25 }
 0x35b   : > { %v1159_v38 = vadd.f32 1e-05, %v1156_v37 }
 0x35d   : > { %2572 = vrsqrt.f32 %v1159_v38  ;;  %v1101_v39 = vpop.permute.xlu1 %1100  ;;  %v1098_v46 = vpop.permute.xlu0 %1097 }
 0x35e   : > { %v1117_v3 = vsel %vm1116_vm2, %v1115_v41, %v1098_v46  ;;  %v1306_v46 = vld [vmem:[%s3846_s2 + $0x488] sm:$0xff] }
 0x35f   : > { %v1119_v29 = vsel %vm1118_vm3, %v1117_v3, %v1101_v39  ;;  %v1304_v39 = vld [vmem:[%s3846_s2 + $0x478] sm:$0xff] }
 0x360   : > { %v2375_v3 = vpack.c.bf16 %v1306_v46, %v1304_v39 }
 0x361   : > { %v1107_v17 = vpop.permute.xlu1 %1106  ;;  %v1104_v30 = vpop.permute.xlu0 %1103 }
 0x362   : > { %v1121_v53 = vsel %vm1120_vm4, %v1119_v29, %v1104_v30  ;;  %v1308_v29 = vld [vmem:[%s3846_s2 + $0x498] sm:$0xff]  ;;  %2376 = vmatprep.subr.bf16.mxu0 %v2375_v3 }
 0x363   : > { %v1123_v63 = vsel %vm1122_vm5, %v1121_v53, %v1107_v17  ;;  %v1305_v17 = vld [vmem:[%s3846_s2 + $0x480] sm:$0xff]  ;;  %v1310_v53 = vld [vmem:[%s3846_s2 + $0x4a8] sm:$0xff] }
 0x364   : > { %v2377_v43 = vpack.c.bf16 %v1305_v17, %v1303_v62  ;;  %v1484_v62 = vld [vmem:[%s3846_s2 + $0x4d0] sm:$0xff]  ;;  %v1489_v17 = vld [vmem:[%s3846_s2 + $0x4f8] sm:$0xff] }
 0x365   : > { %v1113_v61 = vpop.permute.xlu1 %1112  ;;  %v1110_v8 = vpop.permute.xlu0 %1109 }
 0x366   : > { %v1125_v28 = vsel %vm1124_vm6, %v1123_v63, %v1110_v8  ;;  %v1309_v63 = vld [vmem:[%s3846_s2 + $0x4a0] sm:$0xff]  ;;  %v2379_v8 = vpack.c.bf16 %v1310_v53, %v1308_v29  ;;  %2378 = vmatpush1.bf16.msra.mxu0 %v2377_v43  ;;  %v1491_v29 = vld [vmem:[%s3846_s2 + $0x508] sm:$0xff]  ;;  %v1488_v53 = vld [vmem:[%s3846_s2 + $0x4f0] sm:$0xff] }
 0x367   : > { %v2573_v33 = vpop.eup %2572  ;;  %v1127_v48 = vsel %vm1126_vm7, %v1125_v28, %v1113_v61  ;;  %v1307_v61 = vld [vmem:[%s3846_s2 + $0x490] sm:$0xff]  ;;  %v2403_v43 = vpack.c.bf16 %v1491_v29, %v1489_v17  ;;  %v1686_v17 = vld [vmem:[%s3847_s3 + $0x60] sm:$0xff]  ;;  %v1687_v29 = vld [vmem:[%s3847_s3 + $0x68] sm:$0xff] }
 0x368   : > { %v1165_v44 = vcombine.low %v2573_v33, %v2571_v19  ;;  %v1185_v6 = vrot.slane %v1127_v48, %v3107_v36  ;;  %v1312_v19 = vld [vmem:[%s3846_s2 + $0x4b8] sm:$0xff]  ;;  %v2381_v28 = vpack.c.bf16 %v1309_v63, %v1307_v61  ;;  %v1311_v33 = vld [vmem:[%s3846_s2 + $0x4b0] sm:$0xff]  ;;  %2380 = vmatprep.subr.bf16.mxu0 %v2379_v8  ;;  %v1490_v61 = vld [vmem:[%s3846_s2 + $0x500] sm:$0xff] }
 0x369   : > { %v1493_v63 = vld [vmem:[%s3846_s2 + $0x518] sm:$0xff]  ;;  %v1495_v8 = vld [vmem:[%s3846_s2 + $0x528] sm:$0xff] }
 0x36a   : > { %v1172_v51 = vrot.slane %v1165_v44, %v1171_v22  ;;  %v1186_v35 = vsub.f32 %v3373_v16, %v1185_v6  ;;  %v1187_v12 = vsub.f32 %v3375_v42, %v1185_v6  ;;  %v1188_v26 = vsub.f32 %v3387_v40, %v1185_v6  ;;  %v1313_v44 = vld [vmem:[%s3846_s2 + $0x4c0] sm:$0xff]  ;;  %2382 = vmatpush1.bf16.msra.mxu0 %v2381_v28  ;;  %v1492_v28 = vld [vmem:[%s3846_s2 + $0x510] sm:$0xff] }
 0x36b   : > { %v1189_v34 = vsub.f32 %v3394_v5, %v1185_v6  ;;  %v1190_v49 = vsub.f32 %v3401_v60, %v1185_v6  ;;  %v1191_v50 = vsub.f32 %v3408_v20, %v1185_v6  ;;  %v1192_v55 = vsub.f32 %v3415_v45, %v1185_v6 }
 0x36c   : > { %v1179_v11 = vrot.slane %v1172_v51, %v1171_v22  ;;  %v1193_v57 = vsub.f32 %v3422_v54, %v1185_v6  ;;  %v1314_v22 = vld [vmem:[%s3846_s2 + $0x4c8] sm:$0xff]  ;;  %v2385_v51 = vpack.c.bf16 %v1313_v44, %v1311_v33  ;;  %v1494_v33 = vld [vmem:[%s3846_s2 + $0x520] sm:$0xff] }
 0x36d   : > { %v2383_v48 = vpack.c.bf16 %v1314_v22, %v1312_v19  ;;  %v1294_v6 = vld [vmem:[%s3846_s2 + $0x428] sm:$0xff]  ;;  %v2405_v19 = vpack.c.bf16 %v1490_v61, %v1488_v53  ;;  %v2407_v22 = vpack.c.bf16 %v1495_v8, %v1493_v63  ;;  %v2409_v44 = vpack.c.bf16 %v1494_v33, %v1492_v28  ;;  %v1689_v53 = vld [vmem:[%s3847_s3 + $0x78] sm:$0xff]  ;;  %v1690_v63 = vld [vmem:[%s3847_s3 + $0x80] sm:$0xff] }
 0x36e   : > { %v1181_v27 = vmul.f32 %v2099_v56, %v1179_v11  ;;  %v1292_v56 = vld [vmem:[%s3846_s2 + $0x418] sm:$0xff]  ;;  %v1691_v8 = vld [vmem:[%s3847_s3 + $0x88] sm:$0xff] }
 0x36f   : > { %2384 = vmatprep.subr.bf16.mxu0 %v2383_v48  ;;  %v2387_v11 = vpack.c.bf16 %v1294_v6, %v1292_v56  ;;  %v1595_v48 = vld [vmem:[%s3847_s3] sm:$0xff]  ;;  %v1597_v56 = vld [vmem:[%s3847_s3 + $0x10] sm:$0xff]  ;;  %v2649_v6 = vmov 0.0|0.0   ;;  %v1693_v28 = vld [vmem:[%s3847_s3 + $0x98] sm:$0xff] }
 0x370   : > { %v1198_v52 = vrot.slane %v1181_v27, %v3107_v36  ;;  %2386 = vmatpush1.bf16.msra.mxu0 %v2385_v51  ;;  %v1596_v51 = vld [vmem:[%s3847_s3 + $0x8] sm:$0xff]  ;;  %2441 = vmatprep.subr.bf16.mxu1 %v2649_v6 }
 0x371   : > { %2388 = vmatprep.subr.bf16.mxu0 %v2387_v11  ;;  %v2412_v11 = vpack.c.bf16 %v1596_v51, %v1595_v48  ;;  %v1879_v48 = vld [vmem:[%s3847_s3 + $0xb0] sm:$0xff]  ;;  %v1880_v51 = vld [vmem:[%s3847_s3 + $0xb8] sm:$0xff] }
 0x372   : > { %v1200_v58 = vmul.f32 %v1198_v52, %v1186_v35  ;;  %v1201_v16 = vmul.f32 %v1198_v52, %v1187_v12  ;;  %v1202_v59 = vmul.f32 %v1198_v52, %v1188_v26  ;;  %v1203_v0 = vmul.f32 %v1198_v52, %v1189_v34 }
 0x373   : > { %v1204_v1 = vmul.f32 %v1198_v52, %v1190_v49  ;;  %v1205_v4 = vmul.f32 %v1198_v52, %v1191_v50  ;;  %v1206_v9 = vmul.f32 %v1198_v52, %v1192_v55  ;;  %v1207_v42 = vmul.f32 %v1198_v52, %v1193_v57 }
 0x374   : > { %v1216_v10 = vadd.f32 %v1214_v47, %v1200_v58  ;;  %v1217_v40 = vadd.f32 %v1214_v47, %v1201_v16  ;;  %v1218_v13 = vadd.f32 %v1214_v47, %v1202_v59  ;;  %v1219_v5 = vadd.f32 %v1214_v47, %v1203_v0  ;;  %v1291_v58 = vld [vmem:[%s3846_s2 + $0x410] sm:$0xff]  ;;  %v1293_v16 = vld [vmem:[%s3846_s2 + $0x420] sm:$0xff]  ;;  %v1296_v59 = vld [vmem:[%s3846_s2 + $0x438] sm:$0xff] }
 0x375   : > { %v1220_v14 = vadd.f32 %v1214_v47, %v1204_v1  ;;  %v1221_v60 = vadd.f32 %v1214_v47, %v1205_v4  ;;  %v1222_v15 = vadd.f32 %v1214_v47, %v1206_v9  ;;  %v1223_v20 = vadd.f32 %v1214_v47, %v1207_v42  ;;  %v1298_v0 = vld [vmem:[%s3846_s2 + $0x448] sm:$0xff] }
 0x376   : > { %v1224_v18 = vmax.f32 %v1216_v10, 0.0  ;;  %v1225_v45 = vmax.f32 %v1217_v40, 0.0  ;;  %v1226_v21 = vmax.f32 %v1218_v13, 0.0  ;;  %v1227_v54 = vmax.f32 %v1219_v5, 0.0  ;;  %v1295_v40 = vld [vmem:[%s3846_s2 + $0x430] sm:$0xff]  ;;  %v1297_v13 = vld [vmem:[%s3846_s2 + $0x440] sm:$0xff] }
 0x377   : > { %v1229_v23 = vmax.f32 %v1221_v60, 0.0  ;;  %v1230_v25 = vmax.f32 %v1222_v15, 0.0  ;;  %v1228_v32 = vmax.f32 %v1220_v14, 0.0  ;;  %v1231_v38 = vmax.f32 %v1223_v20, 0.0  ;;  %v1300_v14 = vld [vmem:[%s3846_s2 + $0x458] sm:$0xff]  ;;  %v1302_v60 = vld [vmem:[%s3846_s2 + $0x468] sm:$0xff] }
 0x378   : > { %v1232_v31 = vmax.f32 %v1224_v18, %v1225_v45  ;;  %v1233_v37 = vmax.f32 %v1226_v21, %v1227_v54  ;;  %v2389_v9 = vpack.c.bf16 %v1293_v16, %v1291_v58  ;;  %v2391_v10 = vpack.c.bf16 %v1298_v0, %v1296_v59  ;;  %v1299_v54 = vld [vmem:[%s3846_s2 + $0x450] sm:$0xff] }
 0x379   : > { %v1235_v41 = vmax.f32 %v1229_v23, %v1230_v25  ;;  %v2393_v18 = vpack.c.bf16 %v1297_v13, %v1295_v40  ;;  %v2395_v21 = vpack.c.bf16 %v1302_v60, %v1300_v14  ;;  %v1301_v23 = vld [vmem:[%s3846_s2 + $0x460] sm:$0xff] }
 0x37a   : > { %1252 = vrot.lane.b32.xlu1 %v1232_v31, %s2641_s23  ;;  %1240 = vrot.lane.b32.xlu0 %v1232_v31, %s2642_s14  ;;  %v1234_v2 = vmax.f32 %v1233_v37, %v1228_v32  ;;  %v1487_v32 = vld [vmem:[%s3846_s2 + $0x4e8] sm:$0xff] }
 0x37b   : > { %v1236_v30 = vmax.f32 %v1235_v41, %v1231_v38  ;;  %v2397_v41 = vpack.c.bf16 %v1301_v23, %v1299_v54  ;;  %v1679_v54 = vld [vmem:[%s3847_s3 + $0x28] sm:$0xff] }
 0x37e   : > { %1254 = vrot.lane.b32.xlu1 %v1234_v2, %s2641_s23  ;;  %1242 = vrot.lane.b32.xlu0 %v1234_v2, %s2642_s14 }
 0x382   : > { %1256 = vrot.lane.b32.xlu1 %v1236_v30, %s2641_s23  ;;  %1244 = vrot.lane.b32.xlu0 %v1236_v30, %s2642_s14 }
 0x3ec   : > { %v1253_v24 = vpop.permute.xlu1 %1252  ;;  %v1241_v27 = vpop.permute.xlu0 %1240 }
 0x3ed   : > { %v1249_v35 = vmax.f32 %v1232_v31, %v1241_v27  ;;  %v1485_v31 = vld [vmem:[%s3846_s2 + $0x4d8] sm:$0xff] }
 0x3ee   : > { %v2399_v46 = vpack.c.bf16 %v1487_v32, %v1485_v31  ;;  %v1680_v32 = vld [vmem:[%s3847_s3 + $0x30] sm:$0xff] }
 0x3ef   : > { %v1261_v47 = vmax.f32 %v1249_v35, %v1253_v24  ;;  %v1598_v24 = vld [vmem:[%s3847_s3 + $0x18] sm:$0xff] }
 0x3f0   : > { %v1255_v52 = vpop.permute.xlu1 %1254  ;;  %v1243_v12 = vpop.permute.xlu0 %1242  ;;  %v2415_v27 = vpack.c.bf16 %v1598_v24, %v1597_v56 }
 0x3f1   : > { %v1250_v26 = vmax.f32 %v1234_v2, %v1243_v12  ;;  %1276 = vrot.lane.b32.xlu1 %v1261_v47, %s2643_s27  ;;  %1267 = vrot.lane.b32.xlu0 %v1261_v47, %s2642_s14  ;;  %v1486_v2 = vld [vmem:[%s3846_s2 + $0x4e0] sm:$0xff] }
 0x3f3   : > { %v1262_v34 = vmax.f32 %v1250_v26, %v1255_v52 }
 0x3f4   : > { %v1245_v49 = vpop.permute.xlu0 %1244  ;;  %v1257_v55 = vpop.permute.xlu1 %1256 }
 0x3f5   : > { %v1251_v50 = vmax.f32 %v1236_v30, %v1245_v49  ;;  %1278 = vrot.lane.b32.xlu1 %v1262_v34, %s2643_s27  ;;  %1269 = vrot.lane.b32.xlu0 %v1262_v34, %s2642_s14  ;;  %v2401_v30 = vpack.c.bf16 %v1486_v2, %v1484_v62  ;;  %v1684_v62 = vld [vmem:[%s3847_s3 + $0x50] sm:$0xff]  ;;  %v1685_v2 = vld [vmem:[%s3847_s3 + $0x58] sm:$0xff] }
 0x3f7   : > { %v1263_v57 = vmax.f32 %v1251_v50, %v1257_v55 }
 0x3f9   : > { %1280 = vrot.lane.b32.xlu1 %v1263_v57, %s2643_s27  ;;  %1271 = vrot.lane.b32.xlu0 %v1263_v57, %s2642_s14 }
 0x463   : > { %v1277_v1 = vpop.permute.xlu1 %1276  ;;  %v1268_v4 = vpop.permute.xlu0 %1267 }
 0x464   : > { %v1285_v42 = vsel %vm494_vm1, %v1249_v35, %v1268_v4 }
 0x465   : > { %v1288_v5 = vsel %vm1116_vm2, %v1285_v42, %v1277_v1  ;;  %v2108_v1 = vld [vmem:[%s3846_s2 + $0x533] ss:$8 sm:$0x3] }
 0x466   : > { %2101 = vmatmul.mubr.msk.f32.vlgmr.msra.gmra.mrb[20].mxu0 %vm1118_vm3, %v1288_v5  ;;  %v1583_v42 = vrot.slane %v2108_v1, %v3107_v36  ;;  %v1678_v36 = vld [vmem:[%s3847_s3 + $0x20] sm:$0xff]  ;;  %v2109_v1 = vld [vmem:[%s3847_s3 + $0x128] ss:$0 sm:$0xff] }
 0x467   : > { %2390 = vmatpush1.bf16.msra.mxu0 %v2389_v9  ;;  %v1279_v15 = vpop.permute.xlu1 %1278  ;;  %v1270_v20 = vpop.permute.xlu0 %1269  ;;  %1393 = vmatprep.mubr.f32.mxu0 %v2640_v7 }
 0x468   : > { %v1286_v45 = vsel %vm494_vm1, %v1250_v26, %v1270_v20  ;;  %2392 = vmatprep.subr.bf16.mxu0 %v2391_v10 }
 0x469   : > { %v1289_v25 = vsel %vm1116_vm2, %v1286_v45, %v1279_v15 }
 0x46a   : > { %2102 = vmatmul.mubr.msk.f32.gmra.mrb[22].mxu0 %vm1118_vm3, %v1289_v25 }
 0x46b   : > { %2394 = vmatpush1.bf16.msra.mxu0 %v2393_v18  ;;  %v1281_v37 = vpop.permute.xlu1 %1280  ;;  %v1272_v38 = vpop.permute.xlu0 %1271  ;;  %1398 = vmatprep.mubr.f32.mxu0 %v2640_v7 }
 0x46c   : > { %v1287_v39 = vsel %vm494_vm1, %v1251_v50, %v1272_v38  ;;  %2396 = vmatprep.subr.bf16.mxu0 %v2395_v21 }
 0x46d   : > { %v1290_v3 = vsel %vm1116_vm2, %v1287_v39, %v1281_v37  ;;  %v1681_v37 = vld [vmem:[%s3847_s3 + $0x38] sm:$0xff]  ;;  %v1683_v39 = vld [vmem:[%s3847_s3 + $0x48] sm:$0xff] }
 0x46e   : > { %2103 = vmatmul.mubr.msk.f32.gmra.mrb[24].mxu0 %vm1118_vm3, %v1290_v3  ;;  %v2421_v38 = vpack.c.bf16 %v1681_v37, %v1680_v32 }
 0x46f   : > { %2398 = vmatpush1.bf16.msra.mxu0 %v2397_v41  ;;  %1469 = vmatprep.mubr.f32.mxu0 %v2640_v7  ;;  %v1682_v41 = vld [vmem:[%s3847_s3 + $0x40] sm:$0xff] }
 0x470   : > { %2400 = vmatprep.subr.bf16.mxu0 %v2399_v46  ;;  %v2424_v46 = vpack.c.bf16 %v1683_v39, %v1682_v41 }
 0x472   : > { %1470 = vmatmul.mubr.f32.vlgmr.msra.gmra.mrb[26].mxu0 %v2640_v7 }
 0x473   : > { %2402 = vmatpush1.bf16.msra.mxu0 %v2401_v30  ;;  %1474 = vmatprep.mubr.f32.mxu0 %v2640_v7  ;;  %v2430_v30 = vpack.c.bf16 %v1687_v29, %v1686_v17 }
 0x474   : > { %2404 = vmatprep.subr.bf16.mxu0 %v2403_v43  ;;  %v1688_v43 = vld [vmem:[%s3847_s3 + $0x70] sm:$0xff] }
 0x475   : > { %v2433_v61 = vpack.c.bf16 %v1689_v53, %v1688_v43  ;;  %v2111_v53 = vld [vmem:[%s3847_s3 + $0x129] ss:$0 sm:$0xff] }
 0x476   : > { %2104 = vmatmul.mubr.msk.f32.gmra.mrb[28].mxu0 %vm1118_vm3, %v1288_v5 }
 0x477   : > { %2406 = vmatpush1.bf16.msra.mxu0 %v2405_v19  ;;  %1479 = vmatprep.mubr.f32.mxu0 %v2640_v7  ;;  %v2436_v19 = vpack.c.bf16 %v1691_v8, %v1690_v63  ;;  %v2112_v63 = vld [vmem:[%s3847_s3 + $0x12a] ss:$0 sm:$0xff] }
 0x478   : > { %2408 = vmatprep.subr.bf16.mxu0 %v2407_v22  ;;  %v1692_v22 = vld [vmem:[%s3847_s3 + $0x90] sm:$0xff] }
 0x479   : > { %v2439_v33 = vpack.c.bf16 %v1693_v28, %v1692_v22 }
 0x47a   : > { %2105 = vmatmul.mubr.msk.f32.gmra.mrb[30].mxu0 %vm1118_vm3, %v1289_v25 }
 0x47b   : > { %2410 = vmatpush1.bf16.msra.mxu0 %v2409_v44  ;;  %1560 = vmatprep.mubr.f32.mxu0 %v2640_v7  ;;  %v1878_v44 = vld [vmem:[%s3847_s3 + $0xa8] sm:$0xff] }
 0x47c   : > { %2411 = vmatprep.subr.bf16.mxu0 %v2649_v6  ;;  %v2442_v56 = vpack.c.bf16 %v1879_v48, %v1878_v44 }
 0x47e   : > { %2106 = vmatmul.mubr.msk.f32.vlgmr.msra.gmra.mrb[32].mxu0 %vm1118_vm3, %v1289_v25  ;;  %v2418_v25 = vpack.c.bf16 %v1679_v54, %v1678_v36  ;;  %2443 = vmatpush3.bf16.msra.mxu1 %v2442_v56 }
 0x47f   : > { %1565 = vmatprep.mubr.f32.mxu0 %v2640_v7  ;;  %2413 = vmatpush3.bf16.msra.mxu0 %v2412_v11  ;;  %v1881_v11 = vld [vmem:[%s3847_s3 + $0xc0] sm:$0xff] }
 0x480   : > { %2414 = vmatprep.subr.bf16.mxu0 %v2649_v6  ;;  %v2445_v24 = vpack.c.bf16 %v1881_v11, %v1880_v51  ;;  %2444 = vmatprep.subr.bf16.mxu1 %v2649_v6 }
 0x482   : > { %2107 = vmatmul.mubr.msk.f32.gmra.mrb[34].mxu0 %vm1118_vm3, %v1290_v3  ;;  %v2427_v3 = vpack.c.bf16 %v1685_v2, %v1684_v62  ;;  %2446 = vmatpush3.bf16.msra.mxu1 %v2445_v24 }
 0x483   : > { %1570 = vmatprep.mubr.f32.mxu0 %v2640_v7  ;;  %2416 = vmatpush3.bf16.msra.mxu0 %v2415_v27  ;;  %v1882_v27 = vld [vmem:[%s3847_s3 + $0xc8] sm:$0xff] }
 0x484   : > { %2417 = vmatprep.subr.bf16.mxu0 %v2649_v6  ;;  %2447 = vmatprep.subr.bf16.mxu1 %v2649_v6 }
 0x486   : > { %1571 = vmatmul.mubr.f32.gmra.mrb[36].mxu0 %v2640_v7 }
 0x487   : > { %2169 = vmatprep.mubr.msk.f32.mxu0 %vm2650_vm8, %v2640_v7 }
 0x539   : > { %v1390_v35 = vpop.f32.mrb[20].mxu0 }
 0x53a   : > { %v1392_v47 = vpop.f32.mrb[21].mxu0 }
 0x53d   : > { %v1395_v52 = vpop.f32.mrb[22].mxu0 }
 0x53e   : > { %v1397_v12 = vpop.f32.mrb[23].mxu0 }
 0x53f   : > { %v1885_v12 = vld [vmem:[%s3847_s3 + $0xe0] sm:$0xff] }
 0x541   : > { %v1400_v26 = vpop.f32.mrb[24].mxu0 }
 0x542   : > { %v1401_v34 = vpop.f32.mrb[25].mxu0 }
 0x543   : > { %v1886_v34 = vld [vmem:[%s3847_s3 + $0xe8] sm:$0xff] }
 0x545   : > { %v1471_v49 = vpop.f32.mrb[26].mxu0 }
 0x546   : > { %v1472_v50 = vadd.f32 %v1471_v49, %v1390_v35  ;;  %v1473_v55 = vpop.f32.mrb[27].mxu0  ;;  %v1883_v35 = vld [vmem:[%s3847_s3 + $0xd0] sm:$0xff] }
 0x547   : > { %v2448_v47 = vpack.c.bf16 %v1883_v35, %v1882_v27  ;;  %v1887_v49 = vld [vmem:[%s3847_s3 + $0xf0] sm:$0xff]  ;;  %v1888_v55 = vld [vmem:[%s3847_s3 + $0xf8] sm:$0xff] }
 0x549   : > { %v1476_v57 = vpop.f32.mrb[28].mxu0  ;;  %2449 = vmatpush3.bf16.msra.mxu1 %v2448_v47 }
 0x54a   : > { %v1477_v58 = vadd.f32 %v1476_v57, %v1395_v52  ;;  %v1478_v16 = vpop.f32.mrb[29].mxu0  ;;  %v1884_v52 = vld [vmem:[%s3847_s3 + $0xd8] sm:$0xff]  ;;  %2450 = vmatprep.subr.bf16.mxu1 %v2649_v6  ;;  %v1889_v57 = vld [vmem:[%s3847_s3 + $0x100] sm:$0xff] }
 0x54b   : > { %v2451_v26 = vpack.c.bf16 %v1885_v12, %v1884_v52  ;;  %v1890_v16 = vld [vmem:[%s3847_s3 + $0x108] sm:$0xff] }
 0x54d   : > { %v1481_v59 = vpop.f32.mrb[30].mxu0  ;;  %2452 = vmatpush3.bf16.msra.mxu1 %v2451_v26 }
 0x54e   : > { %v1482_v0 = vpop.f32.mrb[31].mxu0  ;;  %2453 = vmatprep.subr.bf16.mxu1 %v2649_v6  ;;  %v1891_v59 = vld [vmem:[%s3847_s3 + $0x110] sm:$0xff] }
 0x54f   : > { %v2460_v0 = vpack.c.bf16 %v1891_v59, %v1890_v16 }
 0x551   : > { %v1562_v4 = vpop.f32.mrb[32].mxu0 }
 0x552   : > { %v1575_v9 = vadd.f32 %v1562_v4, %v1472_v50  ;;  %v1564_v10 = vpop.f32.mrb[33].mxu0  ;;  %v2454_v50 = vpack.c.bf16 %v1887_v49, %v1886_v34 }
 0x554   : > { %v1585_v13 = vadd.f32 %v1583_v42, %v1575_v9  ;;  %2455 = vmatpush3.bf16.msra.mxu1 %v2454_v50 }
 0x555   : > { %v1567_v40 = vpop.f32.mrb[34].mxu0  ;;  %2456 = vmatprep.subr.bf16.mxu1 %v2649_v6 }
 0x556   : > { %v1576_v5 = vadd.f32 %v1567_v40, %v1477_v58  ;;  %v1569_v14 = vpop.f32.mrb[35].mxu0  ;;  %v1587_v20 = vmax.f32 %v1585_v13, 0.0  ;;  %v2457_v58 = vpack.c.bf16 %v1889_v57, %v1888_v55  ;;  %v1798_v40 = vld [vmem:[%s3847_s3 + $0xa0] sm:$0xff]  ;;  %v1892_v13 = vld [vmem:[%s3847_s3 + $0x118] sm:$0xff] }
 0x558   : > { %v1586_v60 = vadd.f32 %v1583_v42, %v1576_v5  ;;  %2458 = vmatpush3.bf16.msra.mxu1 %v2457_v58  ;;  %v1893_v5 = vld [vmem:[%s3847_s3 + $0x120] sm:$0xff] }
 0x559   : > { %v1572_v15 = vpop.f32.mrb[36].mxu0  ;;  %2459 = vmatprep.subr.bf16.mxu1 %v2649_v6  ;;  %v2463_v14 = vpack.c.bf16 %v1893_v5, %v1892_v13 }
 0x55a   : > { %v1588_v18 = vmax.f32 %v1586_v60, 0.0  ;;  %v1573_v45 = vpop.f32.mrb[37].mxu0 }
 0x55c   : > { %v1589_v21 = vmax.f32 %v1587_v20, %v1588_v18  ;;  %2461 = vmatpush3.bf16.msra.mxu1 %v2460_v0  ;;  %v2113_v20 = vld [vmem:[%s3847_s3 + $0x12b] ss:$0 sm:$0xff] }
 0x55d   : > { %2462 = vmatprep.subr.bf16.mxu1 %v2649_v6 }
 0x55e   : > { %1591 = vrot.lane.b32.xlu0 %v1589_v21, %s2641_s23  ;;  %s2580_s23 = sshll.u32 %s2651_s19, 4  ;;  %s2581_s23 = int_to_ptr.vmem [resolvable:$false] %s2580_s23 }
 0x55f   : > { %s2582_s22 = scalar_lea.vmem %s2581_s23, 256 }
 0x560   : > { %2464 = vmatpush3.bf16.msra.mxu1 %v2463_v14 }
 0x5d0   : > { %v1592_v23 = vpop.permute.xlu0 %1591 }
 0x5d1   : > { %v1594_v31 = vmax.f32 %v1589_v21, %v1592_v23 }
 0x5d3   : > { %2170 = vmatmul.mubr.msk.f32.vlgmr.msra.gmra.mrb[38].mxu0 %vm1116_vm2, %v1594_v31 }
 0x5d4   : > { %2419 = vmatpush3.bf16.msra.mxu0 %v2418_v25  ;;  %2204 = vmatprep.mubr.msk.f32.mxu0 %vm2650_vm8, %v2640_v7 }
 0x5d5   : > { %2420 = vmatprep.subr.bf16.mxu0 %v2649_v6 }
 0x5d8   : > { %2422 = vmatpush3.bf16.msra.mxu0 %v2421_v38 }
 0x5d9   : > { %2423 = vmatprep.subr.bf16.mxu0 %v2649_v6 }
 0x5dc   : > { %2425 = vmatpush3.bf16.msra.mxu0 %v2424_v46 }
 0x5dd   : > { %2426 = vmatprep.subr.bf16.mxu0 %v2649_v6 }
 0x5e0   : > { %2428 = vmatpush3.bf16.msra.mxu0 %v2427_v3 }
 0x5e1   : > { %2429 = vmatprep.subr.bf16.mxu0 %v2649_v6 }
 0x5e4   : > { %2431 = vmatpush3.bf16.msra.mxu0 %v2430_v30 }
 0x5e5   : > { %2432 = vmatprep.subr.bf16.mxu0 %v2649_v6 }
 0x5e8   : > { %2434 = vmatpush3.bf16.msra.mxu0 %v2433_v61 }
 0x5e9   : > { %2435 = vmatprep.subr.bf16.mxu0 %v2649_v6 }
 0x5ec   : > { %2437 = vmatpush3.bf16.msra.mxu0 %v2436_v19  ;;  %v2115_v19 = vld [vmem:[%s3847_s3 + $0x12c] ss:$0 sm:$0xff] }
 0x5ed   : > { %2438 = vmatprep.subr.bf16.mxu0 %v2649_v6  ;;  %v1797_v6 = vld [vmem:[%s212_s9] sm:$0xff]  ;;  %s1986_s9 = sshll.u32 %s203_s8, 4  ;;  %s3804_s9 = int_to_ptr.vmem [resolvable:$true] %s1986_s9 }
 0x5ee   : > { %s2576_s20 = scalar_lea.vmem %s3804_s9, 128  ;;  %p2583_p0 = scmp.lt.s32.totalorder %s3804_s9, %s2581_s23 }
 0x5ef   : > { %p2577_p11 = scmp.ne.s32.totalorder %s3804_s9, %s2576_s20  ;;  %p2584_p1 = scmp.lt.s32.totalorder %s2582_s22, %s2576_s20 }
 0x5f0   : > { %2440 = vmatpush3.bf16.msra.mxu0 %v2439_v33 }
 0x5f1   : > { %2207 = vmatprep.subr.mxu0 %v2640_v7  ;;  %p2578_p12 = pnand %p2577_p11, %p2715_p5  ;;  %p2585_p2 = por %p2584_p1, %p2583_p0 }
 0x5f3   : > { %p2579_p13 = pneg %p2578_p12 }
 0x5f5   : > { %p2586_p3 = pnand %p2585_p2, %p2579_p13 }
 0x6a6   : > { %v1673_v4 = vpop.f32.mrb[38].mxu0 }
 0x6a7   : > { %v1674_v9 = vadd.f32 %v2109_v1, %v1673_v4  ;;  %v2171_v42 = vpop.f32.mrb[39].mxu0 }
 0x6a9   : > { %v1677_v10 = vmax.f32 %v1674_v9, 0.0 }
 0x6ab   : > { %2205 = vmatmul.mubr.f32.vlgmr.msra.gmra.mrb[40].mxu0 %v1677_v10 }
 0x6ac   : > { %2208 = vmatpush3.msra.mxu0 %v1798_v40  ;;  %2209 = vmatprep.mubr.msk.f32.mxu0 %vm2650_vm8, %v2640_v7 }
 0x6af   : > { %2210 = vmatmul.mubr.msk.f32.vlgmr.msra.gmra.mrb[42].mxu0 %vm1804_vm9, %v1797_v6 }
 0x77e   : > { %v1760_v60 = vpop.f32.mrb[40].mxu0 }
 0x77f   : > { %v2206_v15 = vpop.f32.mrb[41].mxu0  ;;  %v1764_v21 = vrot.slane %v1760_v60, 4 }
 0x781   : > { %v1765_v36 = vadd.f32 %v1764_v21, %v1760_v60 }
 0x782   : > { %v1874_v7 = vpop.f32.mrb[42].mxu0 }
 0x783   : > { %v1875_v18 = vadd.f32 %v2113_v20, %v1874_v7  ;;  %v2211_v45 = vpop.f32.mrb[43].mxu0  ;;  %v1766_v54 = vrot.slane %v1765_v36, 2 }
 0x785   : > { %2245 = vmatmul.mubr.f32.vlgmr.msra.gmra.mrb[18].mxu1 %v1875_v18  ;;  %v1767_v23 = vadd.f32 %v1766_v54, %v1765_v36 }
 0x787   : > { %v1768_v25 = vrot.slane %v1767_v23, 1 }
 0x789   : > { %v1769_v31 = vadd.f32 %v1768_v25, %v1767_v23 }
 0x78b   : > { %v1771_v32 = vmul.f32 0.125, %v1769_v31 }
 0x78d   : > { %v1772_v37 = vsub.f32 %v1760_v60, %v1771_v32 }
 0x78f   : > { %v1773_v38 = vmul.f32 %v1772_v37, %v1772_v37 }
 0x791   : > { %v1774_v41 = vrot.slane %v1773_v38, 4 }
 0x793   : > { %v1775_v39 = vadd.f32 %v1774_v41, %v1773_v38 }
 0x795   : > { %v1776_v46 = vrot.slane %v1775_v39, 2 }
 0x797   : > { %v1777_v62 = vadd.f32 %v1776_v46, %v1775_v39 }
 0x799   : > { %v1778_v2 = vrot.slane %v1777_v62, 1 }
 0x79b   : > { %v1779_v3 = vadd.f32 %v1778_v2, %v1777_v62 }
 0x79d   : > { %v1780_v17 = vmul.f32 0.125, %v1779_v3 }
 0x79f   : > { %v1781_v29 = vadd.f32 1e-05, %v1780_v17 }
 0x7a1   : > { %2574 = vrsqrt.f32 %v1781_v29 }
 0x7ab   : > { %v2575_v30 = vpop.eup %2574 }
 0x7ac   : > { %v1783_v43 = vmul.f32 %v2575_v30, %v1772_v37 }
 0x7ae   : > { %v1789_v61 = vmul.f32 %v2111_v53, %v1783_v43 }
 0x7b0   : > { %v1795_v8 = vadd.f32 %v2112_v63, %v1789_v61 }
 0x7b2   : > { %v1796_v28 = vmax.f32 %v1795_v8, 0.0 }
 0x858   : > { %v1965_v22 = vpop.f32.mrb[18].mxu1 }
 0x859   : > { %v1966_v33 = vadd.f32 %v2115_v19, %v1965_v22  ;;  %v2246_v44 = vpop.f32.mrb[19].mxu1 }
 0x85b   : > { %v1969_v48 = vmul.f32 %v1966_v33, %v1796_v28 }
 0x85d   : > { %v1970_v51 = vmax.f32 %v1969_v48, 0.0 }
 0x85f   : > { %1971 = vst [vmem:[%s203_s8] sm:$0xff] %v1970_v51 }
 0x860   : > { %2589 = shalt.err (!%p2586_p3)
}
 0x861   : > { %s2590_s28 = scalar_lea.hbm %s3802_s11, 128  ;;  %s2594_s5 = scalar_lea.hbm %s3848_s4, 512 }
 0x862   : > { %p2591_p4 = scmp.ne.s32.totalorder %s3802_s11, %s2590_s28  ;;  %p2595_p9 = scmp.lt.u32.totalorder %s3802_s11, %s3848_s4 }
 0x863   : > { %p2596_p10 = scmp.lt.u32.totalorder %s2594_s5, %s2590_s28  ;;  %p2598_p12 = scmp.lt.u32.totalorder %s2590_s28, %s3802_s11 }
 0x864   : > { %p2592_p7 = pnand %p2591_p4, %p2715_p5 }
 0x865   : > { %p2597_p11 = por %p2596_p10, %p2595_p9 }
 0x866   : > { %p2593_p8 = pneg %p2592_p7 }
 0x867   : > { %p2599_p13 = por %p2598_p12, %p2597_p11 }
 0x869   : > { %p2600_p0 = pnand %p2599_p13, %p2593_p8 }
 0x86b   : > { %2603 = shalt.err (!%p2600_p0)
}
 0x86c   : > { %2520 = dma.vmem_to_hbm [thread:$0]  (%p2715_p5), %s3804_s9, 128, %s3802_s11, %s1973_s13  }
 0x86d PF: > { %p2526_p1 = scmp.ge.s32.totalorder %s2638_s18, 2  ;;  %s1998_s27 = sand.u32 1, %s2626_s15  }
 0x86e   : > { %s1999_s6 = scalar_lea.sflag [#allocation3], %s1998_s27 }
 0x86f   : > { %p2523_p2 = pnand %p2526_p1, %p2719_p6 }
 0x871   : > { %2621 = dma.done.wait (!%p2523_p2), %s1999_s6, 128  }
 0x872   : > { %2623 = vsyncadd (!%p2523_p2), %s1999_s6, 4294967168  ;;  %p14_p3 = scmp.ge.s32.totalorder %s2702_s21, 6   ;;  %s3851_s15 = smov %s2630_s16 }
 0x873   : > { %s3852_s16 = smov %s2634_s17  ;;  %s3853_s17 = smov %s2713_s24 }
 0x874   : > { %s3854_s18 = smov %s2702_s21  ;;  %16 = sbr.rel (!%p14_p3) target bundleno = 3 (0x3), region = 78 }
 0x87b   :  { %2004 = vsyncpa [#allocation3], 1 }
 0x87c   :  { %2006 = vsyncpa [#allocation3 + $0x1], 1 }

</bundles_post_ra>
